<compile_context>
chip_gen: v7x
topology: tpu7x:2x2x1
jax: 0.10.0
libtpu: 0.0.40
codegen_flags: <defaults>
</compile_context>

<pallas_src>
import functools

import jax
import jax.numpy as jnp
from jax.experimental import pallas as pl
from jax.experimental.pallas import tpu as pltpu


def _round_up(x, m):
    return ((x + m - 1) // m) * m


def _quantization_kernel(h_ref, ct_ref, cg_ref, pred_ref, bal_ref, *,
                         D, L, K, tau, n_total):
    tile_n, hidden = h_ref.shape
    sub = hidden // D
    inv_tau = 1.0 / tau
    f32 = jnp.float32

    # Row-validity mask: rows beyond the true node count (zero padding of the last
    # tile) must not contribute to the balance statistics.
    row = pl.program_id(0) * tile_n + jax.lax.broadcasted_iota(
        jnp.int32, (tile_n, 1), 0)
    row_mask = (row < n_total).astype(f32)                          # (tile_n, 1)

    pred_chunks = []
    for d in range(D):                      # D, L are small compile-time constants
        h_d = h_ref[:, d * sub:(d + 1) * sub]                       # (tile_n, sub)   bf16
        c_d = ct_ref[d]                                             # (sub, total_k)  bf16
        c_gd = cg_ref[d]                                            # (total_k, sub)  bf16

        # ONE fused MXU matmul per chunk covering all L levels at once.
        z_all = jax.lax.dot_general(
            h_d, c_d, (((1,), (0,)), ((), ())),
            preferred_element_type=f32) * inv_tau                   # (tile_n, total_k) f32

        quant_max = None
        start = 0
        for l in range(L):
            Kl = K << l
            z = z_all[:, start:start + Kl]                          # (tile_n, Kl)
            m = jnp.max(z, axis=1, keepdims=True)

            # First-index argmax -> one-hot -> centroid-chunk gather on the MXU.
            iota = jax.lax.broadcasted_iota(jnp.int32, (tile_n, Kl), 1)
            idx = jnp.min(jnp.where(z >= m, iota, Kl), axis=1, keepdims=True)
            onehot = (iota == idx).astype(c_gd.dtype)               # (tile_n, Kl)
            hard = jax.lax.dot_general(
                onehot, c_gd[start:start + Kl, :], (((1,), (0,)), ((), ())),
                preferred_element_type=f32)                         # (tile_n, sub)

            # Straight-through forward value == hard, so the soft-feature matmul
            # is dropped entirely; pred = max over levels of hard.
            quant_max = hard if quant_max is None else jnp.maximum(quant_max, hard)

            # Softmax column sums (masked) -> per-tile balance partials.
            e = jnp.exp(z - m)                                      # f32 on the EUP
            probs = e / jnp.sum(e, axis=1, keepdims=True)
            bal_ref[d:d + 1, start:start + Kl] = jnp.sum(
                probs * row_mask, axis=0, keepdims=True)
            start += Kl

        pred_chunks.append(quant_max)

    # Single lane-dense (tile_n, hidden) store per tile.
    pred_ref[...] = jnp.concatenate(pred_chunks, axis=1).astype(pred_ref.dtype)


def quantization_forward(H, centroids, *, D, L, K, tau=1.0,
                         tile_n=None, compute_dtype=jnp.bfloat16):
    """Pallas forward. Returns (pred (N, hidden) f32, reg scalar f32)."""
    H = jnp.asarray(H)
    centroids = jnp.asarray(centroids)
    N, hidden = H.shape
    total_k = centroids.shape[0]
    assert total_k == K * ((1 << L) - 1), "centroid count mismatch"
    assert hidden % D == 0, "hidden_dim must be divisible by D"
    sub = hidden // D

    if tile_n is None:
        # ~8 MiB for one H(bf16)+pred(f32) tile pair -> double-buffered pipeline
        # stays well under v7x's 64 MiB physical VMEM (and v5e/v6e's 128 MiB).
        bytes_per_row = hidden * (jnp.dtype(compute_dtype).itemsize + 4)
        tile_n = min(1024, max(8, (8 << 20) // max(bytes_per_row, 1)))
    tile_n = max(8, (min(int(tile_n), _round_up(N, 8)) // 8) * 8)
    n_pad = _round_up(N, tile_n)
    num_tiles = n_pad // tile_n

    h = H.astype(compute_dtype)
    if n_pad != N:
        h = jnp.pad(h, ((0, n_pad - N), (0, 0)))

    # One-time wrapper-side relayout of the (small) centroid table:
    #   ct[d, r, k] -- contraction-on-sublanes feed for the fused products matmul
    #   cg[d, k, r] -- row-major feed for the one-hot hard-assignment gather
    c3 = centroids.astype(compute_dtype).reshape(total_k, D, sub)
    ct = jnp.transpose(c3, (1, 2, 0))   # (D, sub, total_k)
    cg = jnp.transpose(c3, (1, 0, 2))   # (D, total_k, sub)

    kernel = functools.partial(_quantization_kernel, D=D, L=L, K=K,
                               tau=float(tau), n_total=N)

    # Explicit VMEM budget (v7x has only 64 MiB physical / 32 MiB scoped default).
    tile_bytes = tile_n * hidden * (h.dtype.itemsize + 4)      # H tile + pred tile
    cent_bytes = 2 * D * sub * total_k * ct.dtype.itemsize     # both resident layouts
    est = 2 * tile_bytes + 2 * cent_bytes + 2 * D * total_k * 4 + (8 << 20)
    vmem_limit = int(min(max(2 * est, 16 << 20), 48 << 20))

    pred_pad, bal_parts = pl.pallas_call(
        kernel,
        grid=(num_tiles,),
        in_specs=[
            pl.BlockSpec((tile_n, hidden), lambda i: (i, 0)),
            pl.BlockSpec((D, sub, total_k), lambda i: (0, 0, 0)),   # VMEM-resident
            pl.BlockSpec((D, total_k, sub), lambda i: (0, 0, 0)),   # VMEM-resident
        ],
        out_specs=(
            pl.BlockSpec((tile_n, hidden), lambda i: (i, 0)),
            pl.BlockSpec((None, D, total_k), lambda i: (i, 0, 0)),  # per-tile partials
        ),
        out_shape=(
            jax.ShapeDtypeStruct((n_pad, hidden), jnp.float32),
            jax.ShapeDtypeStruct((num_tiles, D, total_k), jnp.float32),
        ),
        compiler_params=pltpu.CompilerParams(
            dimension_semantics=("parallel",),
            vmem_limit_bytes=vmem_limit),
    )(h, ct, cg)

    pred = pred_pad[:N]
    # Balance regularizer: reduce per-tile partial column sums, divide by the
    # GLOBAL node count, subtract the per-level target, Frobenius norm.
    bal = jnp.sum(bal_parts, axis=0) / N                            # (D, total_k)
    target = jnp.concatenate(
        [jnp.full((K << l,), 1.0 / (K << l), jnp.float32) for l in range(L)])
    reg = jnp.sqrt(jnp.sum((bal - target[None, :]) ** 2))
    return pred, reg


def reference_forward(H, C, *, D, L, K, tau=1.0):
    """Plain-JAX mirror of the PyTorch forward (for verification)."""
    H = jnp.asarray(H, jnp.float32)
    C = jnp.asarray(C, jnp.float32)
    N, hidden = H.shape
    sub = hidden // D
    Hr = H.reshape(N, D, sub)
    pred = None
    reg_sq = jnp.float32(0.0)
    start = 0
    for j in range(L):
        Kl = K << j
        Cl = C[start:start + Kl].reshape(Kl, D, sub)
        start += Kl
        z = jnp.einsum('ndr,kdr->nkd', Hr, Cl) / tau           # (N, Kl, D)
        idx = jnp.argmax(z, axis=1)                            # (N, D)
        hard = Cl[idx, jnp.arange(D)[None, :], :]              # (N, D, sub)
        probs = jax.nn.softmax(z, axis=1)                      # (N, Kl, D)
        soft = jnp.einsum('nkd,kdr->ndr', probs, Cl)           # (N, D, sub)
        quant_j = ((hard - soft) + soft).reshape(N, hidden)
        pred = quant_j if pred is None else jnp.maximum(pred, quant_j)
        bal = probs.sum(0) / N                                 # (Kl, D)
        reg_sq = reg_sq + ((bal - 1.0 / Kl) ** 2).sum()
    return pred, jnp.sqrt(reg_sq)


if __name__ == "__main__":
    # Small shapes consistent with the module.
    num_nodes, hidden_dim, D, L, K = 8, 32, 4, 3, 2
    num_ks = K * ((1 << L) - 1)     # = 14

    key = jax.random.PRNGKey(0)
    k_h, k_c, k_h2 = jax.random.split(key, 3)
    H = jax.random.normal(k_h, (num_nodes, hidden_dim), dtype=jnp.float32)
    # kaiming_normal_ on (num_ks, hidden_dim): std = sqrt(2 / fan_in), fan_in = hidden_dim
    centroids = jax.random.normal(k_c, (num_ks, hidden_dim), dtype=jnp.float32) * jnp.sqrt(
        2.0 / hidden_dim)

    pred, reg = quantization_forward(H, centroids, D=D, L=L, K=K, tau=1.0)
    jax.block_until_ready((pred, reg))

    # Compare against the reference run on the same bf16-rounded inputs the kernel sees.
    Hb = H.astype(jnp.bfloat16).astype(jnp.float32)
    Cb = centroids.astype(jnp.bfloat16).astype(jnp.float32)
    pred_r, reg_r = reference_forward(Hb, Cb, D=D, L=L, K=K, tau=1.0)
    assert pred.shape == (num_nodes, hidden_dim)
    assert jnp.allclose(pred, pred_r, rtol=1e-3, atol=1e-3), "pred mismatch"
    assert jnp.allclose(reg, reg_r, rtol=1e-3, atol=1e-3), "reg mismatch"

    # Second config: exercises the multi-tile grid, N padding and the row mask.
    H2 = jax.random.normal(k_h2, (50, hidden_dim), dtype=jnp.float32)
    pred2, reg2 = quantization_forward(H2, centroids, D=D, L=L, K=K, tau=1.0, tile_n=16)
    jax.block_until_ready((pred2, reg2))
    pred2_r, reg2_r = reference_forward(H2.astype(jnp.bfloat16).astype(jnp.float32),
                                        Cb, D=D, L=L, K=K, tau=1.0)
    assert jnp.allclose(pred2, pred2_r, rtol=1e-3, atol=1e-3), "pred mismatch (tiled)"
    assert jnp.allclose(reg2, reg2_r, rtol=1e-3, atol=1e-3), "reg mismatch (tiled)"

    print("KERNEL_OK")
</pallas_src>

<mosaic_0001>
module attributes {stable_mosaic.version = 11 : i64} {
  func.func @_quantization_kernel(%arg0: i32, %arg1: memref<8x32xbf16, #tpu.memory_space<vmem>>, %arg2: memref<4x8x14xbf16, #tpu.memory_space<vmem>>, %arg3: memref<4x14x8xbf16, #tpu.memory_space<vmem>>, %arg4: memref<8x32xf32, #tpu.memory_space<vmem>>, %arg5: memref<1x4x14xf32, #tpu.memory_space<vmem>>) attributes {dimension_semantics = [#tpu.dimension_semantics<parallel>], iteration_bounds = array<i64: 1>, scalar_prefetch = 0 : i64, scratch_operands = 0 : i64, tpu.core_type = #tpu.core_type<tc>, window_params = [{transform_indices = @transform_0, window_bounds = array<i64: 8, 32>}, {pipeline_mode = #tpu.pipeline_mode<synchronous>, transform_indices = @transform_1, window_bounds = array<i64: 4, 8, 14>}, {pipeline_mode = #tpu.pipeline_mode<synchronous>, transform_indices = @transform_2, window_bounds = array<i64: 4, 14, 8>}, {transform_indices = @transform_3, window_bounds = array<i64: 8, 32>}, {transform_indices = @transform_4, window_bounds = array<i64: 1, 4, 14>}]} {
    %c8_i32 = arith.constant 8 : i32
    %0 = arith.muli %arg0, %c8_i32 : i32
    %1 = tpu.iota {dimensions = array<i32: 0>} : vector<8x1xi32>
    %2 = vector.broadcast %0 : i32 to vector<8x1xi32>
    %3 = arith.addi %2, %1 : vector<8x1xi32>
    %c8_i32_0 = arith.constant 8 : i32
    %4 = vector.broadcast %c8_i32_0 : i32 to vector<8x1xi32>
    %5 = arith.cmpi slt, %3, %4 : vector<8x1xi32>
    %6 = arith.extui %5 : vector<8x1xi1> to vector<8x1xi32>
    %7 = arith.sitofp %6 : vector<8x1xi32> to vector<8x1xf32>
    %c0 = arith.constant 0 : index
    %c0_1 = arith.constant 0 : index
    %8 = vector.load %arg1[%c0, %c0_1] : memref<8x32xbf16, #tpu.memory_space<vmem>>, vector<8x8xbf16>
    %c0_2 = arith.constant 0 : index
    %c0_3 = arith.constant 0 : index
    %c0_4 = arith.constant 0 : index
    %9 = vector.load %arg2[%c0_2, %c0_3, %c0_4] : memref<4x8x14xbf16, #tpu.memory_space<vmem>>, vector<1x8x14xbf16>
    %10 = vector.shape_cast %9 : vector<1x8x14xbf16> to vector<8x14xbf16>
    %c0_5 = arith.constant 0 : index
    %c0_6 = arith.constant 0 : index
    %c0_7 = arith.constant 0 : index
    %11 = vector.load %arg3[%c0_5, %c0_6, %c0_7] : memref<4x14x8xbf16, #tpu.memory_space<vmem>>, vector<1x14x8xbf16>
    %12 = vector.shape_cast %11 : vector<1x14x8xbf16> to vector<14x8xbf16>
    %cst = arith.constant dense<0.000000e+00> : vector<8x14xf32>
    %13 = tpu.matmul %8, %10, %cst {dimension_numbers = #tpu.dot_dimension_numbers<[1], [0], [0], [1], [0, 0, 1, 1], [], []>} : vector<8x8xbf16>, vector<8x14xbf16>, vector<8x14xf32> -> vector<8x14xf32>
    %cst_8 = arith.constant 1.000000e+00 : f32
    %14 = vector.broadcast %cst_8 : f32 to vector<8x14xf32>
    %15 = arith.mulf %13, %14 : vector<8x14xf32>
    %16 = vector.extract_strided_slice %15 {offsets = [0, 0], sizes = [8, 2], strides = [1, 1]} : vector<8x14xf32> to vector<8x2xf32>
    %cst_9 = arith.constant dense<0xFF800000> : vector<8xf32>
    %17 = vector.multi_reduction <maximumf>, %16, %cst_9 [1] : vector<8x2xf32> to vector<8xf32>
    %18 = vector.shape_cast %17 : vector<8xf32> to vector<8x1xf32>
    %19 = tpu.iota {dimensions = array<i32: 1>} : vector<8x2xi32>
    %20 = vector.broadcast %18 : vector<8x1xf32> to vector<8x2xf32>
    %21 = arith.cmpf oge, %16, %20 : vector<8x2xf32>
    %c2_i32 = arith.constant 2 : i32
    %22 = vector.broadcast %c2_i32 : i32 to vector<8x2xi32>
    %23 = arith.select %21, %19, %22 : vector<8x2xi1>, vector<8x2xi32>
    %cst_10 = arith.constant dense<2147483647> : vector<8xi32>
    %24 = vector.multi_reduction <minsi>, %23, %cst_10 [1] : vector<8x2xi32> to vector<8xi32>
    %25 = vector.shape_cast %24 : vector<8xi32> to vector<8x1xi32>
    %26 = vector.broadcast %25 : vector<8x1xi32> to vector<8x2xi32>
    %27 = arith.cmpi eq, %19, %26 : vector<8x2xi32>
    %28 = arith.extui %27 : vector<8x2xi1> to vector<8x2xi32>
    %29 = arith.sitofp %28 : vector<8x2xi32> to vector<8x2xf32>
    %30 = arith.truncf %29 : vector<8x2xf32> to vector<8x2xbf16>
    %31 = vector.extract_strided_slice %12 {offsets = [0, 0], sizes = [2, 8], strides = [1, 1]} : vector<14x8xbf16> to vector<2x8xbf16>
    %cst_11 = arith.constant dense<0.000000e+00> : vector<8x8xf32>
    %32 = tpu.matmul %30, %31, %cst_11 {dimension_numbers = #tpu.dot_dimension_numbers<[1], [0], [0], [1], [0, 0, 1, 1], [], []>} : vector<8x2xbf16>, vector<2x8xbf16>, vector<8x8xf32> -> vector<8x8xf32>
    %33 = vector.broadcast %18 : vector<8x1xf32> to vector<8x2xf32>
    %34 = arith.subf %16, %33 : vector<8x2xf32>
    %35 = math.exp %34 : vector<8x2xf32>
    %cst_12 = arith.constant dense<0.000000e+00> : vector<8xf32>
    %36 = vector.multi_reduction <add>, %35, %cst_12 [1] : vector<8x2xf32> to vector<8xf32>
    %37 = vector.shape_cast %36 : vector<8xf32> to vector<8x1xf32>
    %38 = vector.broadcast %37 : vector<8x1xf32> to vector<8x2xf32>
    %39 = arith.divf %35, %38 : vector<8x2xf32>
    %40 = vector.broadcast %7 : vector<8x1xf32> to vector<8x2xf32>
    %41 = arith.mulf %39, %40 : vector<8x2xf32>
    %cst_13 = arith.constant dense<0.000000e+00> : vector<2xf32>
    %42 = vector.multi_reduction <add>, %41, %cst_13 [0] : vector<8x2xf32> to vector<2xf32>
    %43 = vector.shape_cast %42 : vector<2xf32> to vector<1x2xf32>
    %c0_14 = arith.constant 0 : index
    %c0_15 = arith.constant 0 : index
    %c0_16 = arith.constant 0 : index
    %44 = vector.load %arg5[%c0_14, %c0_15, %c0_16] : memref<1x4x14xf32, #tpu.memory_space<vmem>>, vector<1x1x2xf32>
    %45 = vector.shape_cast %44 : vector<1x1x2xf32> to vector<1x2xf32>
    %46 = vector.shape_cast %43 : vector<1x2xf32> to vector<1x1x2xf32>
    tpu.vector_store %arg5[%c0_14, %c0_15, %c0_16], %46 {strides = array<i32>} : memref<1x4x14xf32, #tpu.memory_space<vmem>>, vector<1x1x2xf32>,
    %47 = vector.extract_strided_slice %15 {offsets = [0, 2], sizes = [8, 4], strides = [1, 1]} : vector<8x14xf32> to vector<8x4xf32>
    %cst_17 = arith.constant dense<0xFF800000> : vector<8xf32>
    %48 = vector.multi_reduction <maximumf>, %47, %cst_17 [1] : vector<8x4xf32> to vector<8xf32>
    %49 = vector.shape_cast %48 : vector<8xf32> to vector<8x1xf32>
    %50 = tpu.iota {dimensions = array<i32: 1>} : vector<8x4xi32>
    %51 = vector.broadcast %49 : vector<8x1xf32> to vector<8x4xf32>
    %52 = arith.cmpf oge, %47, %51 : vector<8x4xf32>
    %c4_i32 = arith.constant 4 : i32
    %53 = vector.broadcast %c4_i32 : i32 to vector<8x4xi32>
    %54 = arith.select %52, %50, %53 : vector<8x4xi1>, vector<8x4xi32>
    %cst_18 = arith.constant dense<2147483647> : vector<8xi32>
    %55 = vector.multi_reduction <minsi>, %54, %cst_18 [1] : vector<8x4xi32> to vector<8xi32>
    %56 = vector.shape_cast %55 : vector<8xi32> to vector<8x1xi32>
    %57 = vector.broadcast %56 : vector<8x1xi32> to vector<8x4xi32>
    %58 = arith.cmpi eq, %50, %57 : vector<8x4xi32>
    %59 = arith.extui %58 : vector<8x4xi1> to vector<8x4xi32>
    %60 = arith.sitofp %59 : vector<8x4xi32> to vector<8x4xf32>
    %61 = arith.truncf %60 : vector<8x4xf32> to vector<8x4xbf16>
    %62 = vector.extract_strided_slice %12 {offsets = [2, 0], sizes = [4, 8], strides = [1, 1]} : vector<14x8xbf16> to vector<4x8xbf16>
    %cst_19 = arith.constant dense<0.000000e+00> : vector<8x8xf32>
    %63 = tpu.matmul %61, %62, %cst_19 {dimension_numbers = #tpu.dot_dimension_numbers<[1], [0], [0], [1], [0, 0, 1, 1], [], []>} : vector<8x4xbf16>, vector<4x8xbf16>, vector<8x8xf32> -> vector<8x8xf32>
    %64 = arith.maximumf %32, %63 : vector<8x8xf32>
    %65 = vector.broadcast %49 : vector<8x1xf32> to vector<8x4xf32>
    %66 = arith.subf %47, %65 : vector<8x4xf32>
    %67 = math.exp %66 : vector<8x4xf32>
    %cst_20 = arith.constant dense<0.000000e+00> : vector<8xf32>
    %68 = vector.multi_reduction <add>, %67, %cst_20 [1] : vector<8x4xf32> to vector<8xf32>
    %69 = vector.shape_cast %68 : vector<8xf32> to vector<8x1xf32>
    %70 = vector.broadcast %69 : vector<8x1xf32> to vector<8x4xf32>
    %71 = arith.divf %67, %70 : vector<8x4xf32>
    %72 = vector.broadcast %7 : vector<8x1xf32> to vector<8x4xf32>
    %73 = arith.mulf %71, %72 : vector<8x4xf32>
    %cst_21 = arith.constant dense<0.000000e+00> : vector<4xf32>
    %74 = vector.multi_reduction <add>, %73, %cst_21 [0] : vector<8x4xf32> to vector<4xf32>
    %75 = vector.shape_cast %74 : vector<4xf32> to vector<1x4xf32>
    %c0_22 = arith.constant 0 : index
    %c0_23 = arith.constant 0 : index
    %c2 = arith.constant 2 : index
    %76 = vector.load %arg5[%c0_22, %c0_23, %c2] : memref<1x4x14xf32, #tpu.memory_space<vmem>>, vector<1x1x4xf32>
    %77 = vector.shape_cast %76 : vector<1x1x4xf32> to vector<1x4xf32>
    %78 = vector.shape_cast %75 : vector<1x4xf32> to vector<1x1x4xf32>
    tpu.vector_store %arg5[%c0_22, %c0_23, %c2], %78 {strides = array<i32>} : memref<1x4x14xf32, #tpu.memory_space<vmem>>, vector<1x1x4xf32>,
    %79 = vector.extract_strided_slice %15 {offsets = [0, 6], sizes = [8, 8], strides = [1, 1]} : vector<8x14xf32> to vector<8x8xf32>
    %cst_24 = arith.constant dense<0xFF800000> : vector<8xf32>
    %80 = vector.multi_reduction <maximumf>, %79, %cst_24 [1] : vector<8x8xf32> to vector<8xf32>
    %81 = vector.shape_cast %80 : vector<8xf32> to vector<8x1xf32>
    %82 = tpu.iota {dimensions = array<i32: 1>} : vector<8x8xi32>
    %83 = vector.broadcast %81 : vector<8x1xf32> to vector<8x8xf32>
    %84 = arith.cmpf oge, %79, %83 : vector<8x8xf32>
    %c8_i32_25 = arith.constant 8 : i32
    %85 = vector.broadcast %c8_i32_25 : i32 to vector<8x8xi32>
    %86 = arith.select %84, %82, %85 : vector<8x8xi1>, vector<8x8xi32>
    %cst_26 = arith.constant dense<2147483647> : vector<8xi32>
    %87 = vector.multi_reduction <minsi>, %86, %cst_26 [1] : vector<8x8xi32> to vector<8xi32>
    %88 = vector.shape_cast %87 : vector<8xi32> to vector<8x1xi32>
    %89 = vector.broadcast %88 : vector<8x1xi32> to vector<8x8xi32>
    %90 = arith.cmpi eq, %82, %89 : vector<8x8xi32>
    %91 = arith.extui %90 : vector<8x8xi1> to vector<8x8xi32>
    %92 = arith.sitofp %91 : vector<8x8xi32> to vector<8x8xf32>
    %93 = arith.truncf %92 : vector<8x8xf32> to vector<8x8xbf16>
    %94 = vector.extract_strided_slice %12 {offsets = [6, 0], sizes = [8, 8], strides = [1, 1]} : vector<14x8xbf16> to vector<8x8xbf16>
    %cst_27 = arith.constant dense<0.000000e+00> : vector<8x8xf32>
    %95 = tpu.matmul %93, %94, %cst_27 {dimension_numbers = #tpu.dot_dimension_numbers<[1], [0], [0], [1], [0, 0, 1, 1], [], []>} : vector<8x8xbf16>, vector<8x8xbf16>, vector<8x8xf32> -> vector<8x8xf32>
    %96 = arith.maximumf %64, %95 : vector<8x8xf32>
    %97 = vector.broadcast %81 : vector<8x1xf32> to vector<8x8xf32>
    %98 = arith.subf %79, %97 : vector<8x8xf32>
    %99 = math.exp %98 : vector<8x8xf32>
    %cst_28 = arith.constant dense<0.000000e+00> : vector<8xf32>
    %100 = vector.multi_reduction <add>, %99, %cst_28 [1] : vector<8x8xf32> to vector<8xf32>
    %101 = vector.shape_cast %100 : vector<8xf32> to vector<8x1xf32>
    %102 = vector.broadcast %101 : vector<8x1xf32> to vector<8x8xf32>
    %103 = arith.divf %99, %102 : vector<8x8xf32>
    %104 = vector.broadcast %7 : vector<8x1xf32> to vector<8x8xf32>
    %105 = arith.mulf %103, %104 : vector<8x8xf32>
    %cst_29 = arith.constant dense<0.000000e+00> : vector<8xf32>
    %106 = vector.multi_reduction <add>, %105, %cst_29 [0] : vector<8x8xf32> to vector<8xf32>
    %107 = vector.shape_cast %106 : vector<8xf32> to vector<1x8xf32>
    %c0_30 = arith.constant 0 : index
    %c0_31 = arith.constant 0 : index
    %c6 = arith.constant 6 : index
    %108 = vector.load %arg5[%c0_30, %c0_31, %c6] : memref<1x4x14xf32, #tpu.memory_space<vmem>>, vector<1x1x8xf32>
    %109 = vector.shape_cast %108 : vector<1x1x8xf32> to vector<1x8xf32>
    %110 = vector.shape_cast %107 : vector<1x8xf32> to vector<1x1x8xf32>
    tpu.vector_store %arg5[%c0_30, %c0_31, %c6], %110 {strides = array<i32>} : memref<1x4x14xf32, #tpu.memory_space<vmem>>, vector<1x1x8xf32>,
    %c0_32 = arith.constant 0 : index
    %c8 = arith.constant 8 : index
    %111 = vector.load %arg1[%c0_32, %c8] : memref<8x32xbf16, #tpu.memory_space<vmem>>, vector<8x8xbf16>
    %c1 = arith.constant 1 : index
    %c0_33 = arith.constant 0 : index
    %c0_34 = arith.constant 0 : index
    %112 = vector.load %arg2[%c1, %c0_33, %c0_34] : memref<4x8x14xbf16, #tpu.memory_space<vmem>>, vector<1x8x14xbf16>
    %113 = vector.shape_cast %112 : vector<1x8x14xbf16> to vector<8x14xbf16>
    %c1_35 = arith.constant 1 : index
    %c0_36 = arith.constant 0 : index
    %c0_37 = arith.constant 0 : index
    %114 = vector.load %arg3[%c1_35, %c0_36, %c0_37] : memref<4x14x8xbf16, #tpu.memory_space<vmem>>, vector<1x14x8xbf16>
    %115 = vector.shape_cast %114 : vector<1x14x8xbf16> to vector<14x8xbf16>
    %cst_38 = arith.constant dense<0.000000e+00> : vector<8x14xf32>
    %116 = tpu.matmul %111, %113, %cst_38 {dimension_numbers = #tpu.dot_dimension_numbers<[1], [0], [0], [1], [0, 0, 1, 1], [], []>} : vector<8x8xbf16>, vector<8x14xbf16>, vector<8x14xf32> -> vector<8x14xf32>
    %cst_39 = arith.constant 1.000000e+00 : f32
    %117 = vector.broadcast %cst_39 : f32 to vector<8x14xf32>
    %118 = arith.mulf %116, %117 : vector<8x14xf32>
    %119 = vector.extract_strided_slice %118 {offsets = [0, 0], sizes = [8, 2], strides = [1, 1]} : vector<8x14xf32> to vector<8x2xf32>
    %cst_40 = arith.constant dense<0xFF800000> : vector<8xf32>
    %120 = vector.multi_reduction <maximumf>, %119, %cst_40 [1] : vector<8x2xf32> to vector<8xf32>
    %121 = vector.shape_cast %120 : vector<8xf32> to vector<8x1xf32>
    %122 = tpu.iota {dimensions = array<i32: 1>} : vector<8x2xi32>
    %123 = vector.broadcast %121 : vector<8x1xf32> to vector<8x2xf32>
    %124 = arith.cmpf oge, %119, %123 : vector<8x2xf32>
    %c2_i32_41 = arith.constant 2 : i32
    %125 = vector.broadcast %c2_i32_41 : i32 to vector<8x2xi32>
    %126 = arith.select %124, %122, %125 : vector<8x2xi1>, vector<8x2xi32>
    %cst_42 = arith.constant dense<2147483647> : vector<8xi32>
    %127 = vector.multi_reduction <minsi>, %126, %cst_42 [1] : vector<8x2xi32> to vector<8xi32>
    %128 = vector.shape_cast %127 : vector<8xi32> to vector<8x1xi32>
    %129 = vector.broadcast %128 : vector<8x1xi32> to vector<8x2xi32>
    %130 = arith.cmpi eq, %122, %129 : vector<8x2xi32>
    %131 = arith.extui %130 : vector<8x2xi1> to vector<8x2xi32>
    %132 = arith.sitofp %131 : vector<8x2xi32> to vector<8x2xf32>
    %133 = arith.truncf %132 : vector<8x2xf32> to vector<8x2xbf16>
    %134 = vector.extract_strided_slice %115 {offsets = [0, 0], sizes = [2, 8], strides = [1, 1]} : vector<14x8xbf16> to vector<2x8xbf16>
    %cst_43 = arith.constant dense<0.000000e+00> : vector<8x8xf32>
    %135 = tpu.matmul %133, %134, %cst_43 {dimension_numbers = #tpu.dot_dimension_numbers<[1], [0], [0], [1], [0, 0, 1, 1], [], []>} : vector<8x2xbf16>, vector<2x8xbf16>, vector<8x8xf32> -> vector<8x8xf32>
    %136 = vector.broadcast %121 : vector<8x1xf32> to vector<8x2xf32>
    %137 = arith.subf %119, %136 : vector<8x2xf32>
    %138 = math.exp %137 : vector<8x2xf32>
    %cst_44 = arith.constant dense<0.000000e+00> : vector<8xf32>
    %139 = vector.multi_reduction <add>, %138, %cst_44 [1] : vector<8x2xf32> to vector<8xf32>
    %140 = vector.shape_cast %139 : vector<8xf32> to vector<8x1xf32>
    %141 = vector.broadcast %140 : vector<8x1xf32> to vector<8x2xf32>
    %142 = arith.divf %138, %141 : vector<8x2xf32>
    %143 = vector.broadcast %7 : vector<8x1xf32> to vector<8x2xf32>
    %144 = arith.mulf %142, %143 : vector<8x2xf32>
    %cst_45 = arith.constant dense<0.000000e+00> : vector<2xf32>
    %145 = vector.multi_reduction <add>, %144, %cst_45 [0] : vector<8x2xf32> to vector<2xf32>
    %146 = vector.shape_cast %145 : vector<2xf32> to vector<1x2xf32>
    %c0_46 = arith.constant 0 : index
    %c1_47 = arith.constant 1 : index
    %c0_48 = arith.constant 0 : index
    %147 = vector.load %arg5[%c0_46, %c1_47, %c0_48] : memref<1x4x14xf32, #tpu.memory_space<vmem>>, vector<1x1x2xf32>
    %148 = vector.shape_cast %147 : vector<1x1x2xf32> to vector<1x2xf32>
    %149 = vector.shape_cast %146 : vector<1x2xf32> to vector<1x1x2xf32>
    tpu.vector_store %arg5[%c0_46, %c1_47, %c0_48], %149 {strides = array<i32>} : memref<1x4x14xf32, #tpu.memory_space<vmem>>, vector<1x1x2xf32>,
    %150 = vector.extract_strided_slice %118 {offsets = [0, 2], sizes = [8, 4], strides = [1, 1]} : vector<8x14xf32> to vector<8x4xf32>
    %cst_49 = arith.constant dense<0xFF800000> : vector<8xf32>
    %151 = vector.multi_reduction <maximumf>, %150, %cst_49 [1] : vector<8x4xf32> to vector<8xf32>
    %152 = vector.shape_cast %151 : vector<8xf32> to vector<8x1xf32>
    %153 = tpu.iota {dimensions = array<i32: 1>} : vector<8x4xi32>
    %154 = vector.broadcast %152 : vector<8x1xf32> to vector<8x4xf32>
    %155 = arith.cmpf oge, %150, %154 : vector<8x4xf32>
    %c4_i32_50 = arith.constant 4 : i32
    %156 = vector.broadcast %c4_i32_50 : i32 to vector<8x4xi32>
    %157 = arith.select %155, %153, %156 : vector<8x4xi1>, vector<8x4xi32>
    %cst_51 = arith.constant dense<2147483647> : vector<8xi32>
    %158 = vector.multi_reduction <minsi>, %157, %cst_51 [1] : vector<8x4xi32> to vector<8xi32>
    %159 = vector.shape_cast %158 : vector<8xi32> to vector<8x1xi32>
    %160 = vector.broadcast %159 : vector<8x1xi32> to vector<8x4xi32>
    %161 = arith.cmpi eq, %153, %160 : vector<8x4xi32>
    %162 = arith.extui %161 : vector<8x4xi1> to vector<8x4xi32>
    %163 = arith.sitofp %162 : vector<8x4xi32> to vector<8x4xf32>
    %164 = arith.truncf %163 : vector<8x4xf32> to vector<8x4xbf16>
    %165 = vector.extract_strided_slice %115 {offsets = [2, 0], sizes = [4, 8], strides = [1, 1]} : vector<14x8xbf16> to vector<4x8xbf16>
    %cst_52 = arith.constant dense<0.000000e+00> : vector<8x8xf32>
    %166 = tpu.matmul %164, %165, %cst_52 {dimension_numbers = #tpu.dot_dimension_numbers<[1], [0], [0], [1], [0, 0, 1, 1], [], []>} : vector<8x4xbf16>, vector<4x8xbf16>, vector<8x8xf32> -> vector<8x8xf32>
    %167 = arith.maximumf %135, %166 : vector<8x8xf32>
    %168 = vector.broadcast %152 : vector<8x1xf32> to vector<8x4xf32>
    %169 = arith.subf %150, %168 : vector<8x4xf32>
    %170 = math.exp %169 : vector<8x4xf32>
    %cst_53 = arith.constant dense<0.000000e+00> : vector<8xf32>
    %171 = vector.multi_reduction <add>, %170, %cst_53 [1] : vector<8x4xf32> to vector<8xf32>
    %172 = vector.shape_cast %171 : vector<8xf32> to vector<8x1xf32>
    %173 = vector.broadcast %172 : vector<8x1xf32> to vector<8x4xf32>
    %174 = arith.divf %170, %173 : vector<8x4xf32>
    %175 = vector.broadcast %7 : vector<8x1xf32> to vector<8x4xf32>
    %176 = arith.mulf %174, %175 : vector<8x4xf32>
    %cst_54 = arith.constant dense<0.000000e+00> : vector<4xf32>
    %177 = vector.multi_reduction <add>, %176, %cst_54 [0] : vector<8x4xf32> to vector<4xf32>
    %178 = vector.shape_cast %177 : vector<4xf32> to vector<1x4xf32>
    %c0_55 = arith.constant 0 : index
    %c1_56 = arith.constant 1 : index
    %c2_57 = arith.constant 2 : index
    %179 = vector.load %arg5[%c0_55, %c1_56, %c2_57] : memref<1x4x14xf32, #tpu.memory_space<vmem>>, vector<1x1x4xf32>
    %180 = vector.shape_cast %179 : vector<1x1x4xf32> to vector<1x4xf32>
    %181 = vector.shape_cast %178 : vector<1x4xf32> to vector<1x1x4xf32>
    tpu.vector_store %arg5[%c0_55, %c1_56, %c2_57], %181 {strides = array<i32>} : memref<1x4x14xf32, #tpu.memory_space<vmem>>, vector<1x1x4xf32>,
    %182 = vector.extract_strided_slice %118 {offsets = [0, 6], sizes = [8, 8], strides = [1, 1]} : vector<8x14xf32> to vector<8x8xf32>
    %cst_58 = arith.constant dense<0xFF800000> : vector<8xf32>
    %183 = vector.multi_reduction <maximumf>, %182, %cst_58 [1] : vector<8x8xf32> to vector<8xf32>
    %184 = vector.shape_cast %183 : vector<8xf32> to vector<8x1xf32>
    %185 = tpu.iota {dimensions = array<i32: 1>} : vector<8x8xi32>
    %186 = vector.broadcast %184 : vector<8x1xf32> to vector<8x8xf32>
    %187 = arith.cmpf oge, %182, %186 : vector<8x8xf32>
    %c8_i32_59 = arith.constant 8 : i32
    %188 = vector.broadcast %c8_i32_59 : i32 to vector<8x8xi32>
    %189 = arith.select %187, %185, %188 : vector<8x8xi1>, vector<8x8xi32>
    %cst_60 = arith.constant dense<2147483647> : vector<8xi32>
    %190 = vector.multi_reduction <minsi>, %189, %cst_60 [1] : vector<8x8xi32> to vector<8xi32>
    %191 = vector.shape_cast %190 : vector<8xi32> to vector<8x1xi32>
    %192 = vector.broadcast %191 : vector<8x1xi32> to vector<8x8xi32>
    %193 = arith.cmpi eq, %185, %192 : vector<8x8xi32>
    %194 = arith.extui %193 : vector<8x8xi1> to vector<8x8xi32>
    %195 = arith.sitofp %194 : vector<8x8xi32> to vector<8x8xf32>
    %196 = arith.truncf %195 : vector<8x8xf32> to vector<8x8xbf16>
    %197 = vector.extract_strided_slice %115 {offsets = [6, 0], sizes = [8, 8], strides = [1, 1]} : vector<14x8xbf16> to vector<8x8xbf16>
    %cst_61 = arith.constant dense<0.000000e+00> : vector<8x8xf32>
    %198 = tpu.matmul %196, %197, %cst_61 {dimension_numbers = #tpu.dot_dimension_numbers<[1], [0], [0], [1], [0, 0, 1, 1], [], []>} : vector<8x8xbf16>, vector<8x8xbf16>, vector<8x8xf32> -> vector<8x8xf32>
    %199 = arith.maximumf %167, %198 : vector<8x8xf32>
    %200 = vector.broadcast %184 : vector<8x1xf32> to vector<8x8xf32>
    %201 = arith.subf %182, %200 : vector<8x8xf32>
    %202 = math.exp %201 : vector<8x8xf32>
    %cst_62 = arith.constant dense<0.000000e+00> : vector<8xf32>
    %203 = vector.multi_reduction <add>, %202, %cst_62 [1] : vector<8x8xf32> to vector<8xf32>
    %204 = vector.shape_cast %203 : vector<8xf32> to vector<8x1xf32>
    %205 = vector.broadcast %204 : vector<8x1xf32> to vector<8x8xf32>
    %206 = arith.divf %202, %205 : vector<8x8xf32>
    %207 = vector.broadcast %7 : vector<8x1xf32> to vector<8x8xf32>
    %208 = arith.mulf %206, %207 : vector<8x8xf32>
    %cst_63 = arith.constant dense<0.000000e+00> : vector<8xf32>
    %209 = vector.multi_reduction <add>, %208, %cst_63 [0] : vector<8x8xf32> to vector<8xf32>
    %210 = vector.shape_cast %209 : vector<8xf32> to vector<1x8xf32>
    %c0_64 = arith.constant 0 : index
    %c1_65 = arith.constant 1 : index
    %c6_66 = arith.constant 6 : index
    %211 = vector.load %arg5[%c0_64, %c1_65, %c6_66] : memref<1x4x14xf32, #tpu.memory_space<vmem>>, vector<1x1x8xf32>
    %212 = vector.shape_cast %211 : vector<1x1x8xf32> to vector<1x8xf32>
    %213 = vector.shape_cast %210 : vector<1x8xf32> to vector<1x1x8xf32>
    tpu.vector_store %arg5[%c0_64, %c1_65, %c6_66], %213 {strides = array<i32>} : memref<1x4x14xf32, #tpu.memory_space<vmem>>, vector<1x1x8xf32>,
    %c0_67 = arith.constant 0 : index
    %c16 = arith.constant 16 : index
    %214 = vector.load %arg1[%c0_67, %c16] : memref<8x32xbf16, #tpu.memory_space<vmem>>, vector<8x8xbf16>
    %c2_68 = arith.constant 2 : index
    %c0_69 = arith.constant 0 : index
    %c0_70 = arith.constant 0 : index
    %215 = vector.load %arg2[%c2_68, %c0_69, %c0_70] : memref<4x8x14xbf16, #tpu.memory_space<vmem>>, vector<1x8x14xbf16>
    %216 = vector.shape_cast %215 : vector<1x8x14xbf16> to vector<8x14xbf16>
    %c2_71 = arith.constant 2 : index
    %c0_72 = arith.constant 0 : index
    %c0_73 = arith.constant 0 : index
    %217 = vector.load %arg3[%c2_71, %c0_72, %c0_73] : memref<4x14x8xbf16, #tpu.memory_space<vmem>>, vector<1x14x8xbf16>
    %218 = vector.shape_cast %217 : vector<1x14x8xbf16> to vector<14x8xbf16>
    %cst_74 = arith.constant dense<0.000000e+00> : vector<8x14xf32>
    %219 = tpu.matmul %214, %216, %cst_74 {dimension_numbers = #tpu.dot_dimension_numbers<[1], [0], [0], [1], [0, 0, 1, 1], [], []>} : vector<8x8xbf16>, vector<8x14xbf16>, vector<8x14xf32> -> vector<8x14xf32>
    %cst_75 = arith.constant 1.000000e+00 : f32
    %220 = vector.broadcast %cst_75 : f32 to vector<8x14xf32>
    %221 = arith.mulf %219, %220 : vector<8x14xf32>
    %222 = vector.extract_strided_slice %221 {offsets = [0, 0], sizes = [8, 2], strides = [1, 1]} : vector<8x14xf32> to vector<8x2xf32>
    %cst_76 = arith.constant dense<0xFF800000> : vector<8xf32>
    %223 = vector.multi_reduction <maximumf>, %222, %cst_76 [1] : vector<8x2xf32> to vector<8xf32>
    %224 = vector.shape_cast %223 : vector<8xf32> to vector<8x1xf32>
    %225 = tpu.iota {dimensions = array<i32: 1>} : vector<8x2xi32>
    %226 = vector.broadcast %224 : vector<8x1xf32> to vector<8x2xf32>
    %227 = arith.cmpf oge, %222, %226 : vector<8x2xf32>
    %c2_i32_77 = arith.constant 2 : i32
    %228 = vector.broadcast %c2_i32_77 : i32 to vector<8x2xi32>
    %229 = arith.select %227, %225, %228 : vector<8x2xi1>, vector<8x2xi32>
    %cst_78 = arith.constant dense<2147483647> : vector<8xi32>
    %230 = vector.multi_reduction <minsi>, %229, %cst_78 [1] : vector<8x2xi32> to vector<8xi32>
    %231 = vector.shape_cast %230 : vector<8xi32> to vector<8x1xi32>
    %232 = vector.broadcast %231 : vector<8x1xi32> to vector<8x2xi32>
    %233 = arith.cmpi eq, %225, %232 : vector<8x2xi32>
    %234 = arith.extui %233 : vector<8x2xi1> to vector<8x2xi32>
    %235 = arith.sitofp %234 : vector<8x2xi32> to vector<8x2xf32>
    %236 = arith.truncf %235 : vector<8x2xf32> to vector<8x2xbf16>
    %237 = vector.extract_strided_slice %218 {offsets = [0, 0], sizes = [2, 8], strides = [1, 1]} : vector<14x8xbf16> to vector<2x8xbf16>
    %cst_79 = arith.constant dense<0.000000e+00> : vector<8x8xf32>
    %238 = tpu.matmul %236, %237, %cst_79 {dimension_numbers = #tpu.dot_dimension_numbers<[1], [0], [0], [1], [0, 0, 1, 1], [], []>} : vector<8x2xbf16>, vector<2x8xbf16>, vector<8x8xf32> -> vector<8x8xf32>
    %239 = vector.broadcast %224 : vector<8x1xf32> to vector<8x2xf32>
    %240 = arith.subf %222, %239 : vector<8x2xf32>
    %241 = math.exp %240 : vector<8x2xf32>
    %cst_80 = arith.constant dense<0.000000e+00> : vector<8xf32>
    %242 = vector.multi_reduction <add>, %241, %cst_80 [1] : vector<8x2xf32> to vector<8xf32>
    %243 = vector.shape_cast %242 : vector<8xf32> to vector<8x1xf32>
    %244 = vector.broadcast %243 : vector<8x1xf32> to vector<8x2xf32>
    %245 = arith.divf %241, %244 : vector<8x2xf32>
    %246 = vector.broadcast %7 : vector<8x1xf32> to vector<8x2xf32>
    %247 = arith.mulf %245, %246 : vector<8x2xf32>
    %cst_81 = arith.constant dense<0.000000e+00> : vector<2xf32>
    %248 = vector.multi_reduction <add>, %247, %cst_81 [0] : vector<8x2xf32> to vector<2xf32>
    %249 = vector.shape_cast %248 : vector<2xf32> to vector<1x2xf32>
    %c0_82 = arith.constant 0 : index
    %c2_83 = arith.constant 2 : index
    %c0_84 = arith.constant 0 : index
    %250 = vector.load %arg5[%c0_82, %c2_83, %c0_84] : memref<1x4x14xf32, #tpu.memory_space<vmem>>, vector<1x1x2xf32>
    %251 = vector.shape_cast %250 : vector<1x1x2xf32> to vector<1x2xf32>
    %252 = vector.shape_cast %249 : vector<1x2xf32> to vector<1x1x2xf32>
    tpu.vector_store %arg5[%c0_82, %c2_83, %c0_84], %252 {strides = array<i32>} : memref<1x4x14xf32, #tpu.memory_space<vmem>>, vector<1x1x2xf32>,
    %253 = vector.extract_strided_slice %221 {offsets = [0, 2], sizes = [8, 4], strides = [1, 1]} : vector<8x14xf32> to vector<8x4xf32>
    %cst_85 = arith.constant dense<0xFF800000> : vector<8xf32>
    %254 = vector.multi_reduction <maximumf>, %253, %cst_85 [1] : vector<8x4xf32> to vector<8xf32>
    %255 = vector.shape_cast %254 : vector<8xf32> to vector<8x1xf32>
    %256 = tpu.iota {dimensions = array<i32: 1>} : vector<8x4xi32>
    %257 = vector.broadcast %255 : vector<8x1xf32> to vector<8x4xf32>
    %258 = arith.cmpf oge, %253, %257 : vector<8x4xf32>
    %c4_i32_86 = arith.constant 4 : i32
    %259 = vector.broadcast %c4_i32_86 : i32 to vector<8x4xi32>
    %260 = arith.select %258, %256, %259 : vector<8x4xi1>, vector<8x4xi32>
    %cst_87 = arith.constant dense<2147483647> : vector<8xi32>
    %261 = vector.multi_reduction <minsi>, %260, %cst_87 [1] : vector<8x4xi32> to vector<8xi32>
    %262 = vector.shape_cast %261 : vector<8xi32> to vector<8x1xi32>
    %263 = vector.broadcast %262 : vector<8x1xi32> to vector<8x4xi32>
    %264 = arith.cmpi eq, %256, %263 : vector<8x4xi32>
    %265 = arith.extui %264 : vector<8x4xi1> to vector<8x4xi32>
    %266 = arith.sitofp %265 : vector<8x4xi32> to vector<8x4xf32>
    %267 = arith.truncf %266 : vector<8x4xf32> to vector<8x4xbf16>
    %268 = vector.extract_strided_slice %218 {offsets = [2, 0], sizes = [4, 8], strides = [1, 1]} : vector<14x8xbf16> to vector<4x8xbf16>
    %cst_88 = arith.constant dense<0.000000e+00> : vector<8x8xf32>
    %269 = tpu.matmul %267, %268, %cst_88 {dimension_numbers = #tpu.dot_dimension_numbers<[1], [0], [0], [1], [0, 0, 1, 1], [], []>} : vector<8x4xbf16>, vector<4x8xbf16>, vector<8x8xf32> -> vector<8x8xf32>
    %270 = arith.maximumf %238, %269 : vector<8x8xf32>
    %271 = vector.broadcast %255 : vector<8x1xf32> to vector<8x4xf32>
    %272 = arith.subf %253, %271 : vector<8x4xf32>
    %273 = math.exp %272 : vector<8x4xf32>
    %cst_89 = arith.constant dense<0.000000e+00> : vector<8xf32>
    %274 = vector.multi_reduction <add>, %273, %cst_89 [1] : vector<8x4xf32> to vector<8xf32>
    %275 = vector.shape_cast %274 : vector<8xf32> to vector<8x1xf32>
    %276 = vector.broadcast %275 : vector<8x1xf32> to vector<8x4xf32>
    %277 = arith.divf %273, %276 : vector<8x4xf32>
    %278 = vector.broadcast %7 : vector<8x1xf32> to vector<8x4xf32>
    %279 = arith.mulf %277, %278 : vector<8x4xf32>
    %cst_90 = arith.constant dense<0.000000e+00> : vector<4xf32>
    %280 = vector.multi_reduction <add>, %279, %cst_90 [0] : vector<8x4xf32> to vector<4xf32>
    %281 = vector.shape_cast %280 : vector<4xf32> to vector<1x4xf32>
    %c0_91 = arith.constant 0 : index
    %c2_92 = arith.constant 2 : index
    %c2_93 = arith.constant 2 : index
    %282 = vector.load %arg5[%c0_91, %c2_92, %c2_93] : memref<1x4x14xf32, #tpu.memory_space<vmem>>, vector<1x1x4xf32>
    %283 = vector.shape_cast %282 : vector<1x1x4xf32> to vector<1x4xf32>
    %284 = vector.shape_cast %281 : vector<1x4xf32> to vector<1x1x4xf32>
    tpu.vector_store %arg5[%c0_91, %c2_92, %c2_93], %284 {strides = array<i32>} : memref<1x4x14xf32, #tpu.memory_space<vmem>>, vector<1x1x4xf32>,
    %285 = vector.extract_strided_slice %221 {offsets = [0, 6], sizes = [8, 8], strides = [1, 1]} : vector<8x14xf32> to vector<8x8xf32>
    %cst_94 = arith.constant dense<0xFF800000> : vector<8xf32>
    %286 = vector.multi_reduction <maximumf>, %285, %cst_94 [1] : vector<8x8xf32> to vector<8xf32>
    %287 = vector.shape_cast %286 : vector<8xf32> to vector<8x1xf32>
    %288 = tpu.iota {dimensions = array<i32: 1>} : vector<8x8xi32>
    %289 = vector.broadcast %287 : vector<8x1xf32> to vector<8x8xf32>
    %290 = arith.cmpf oge, %285, %289 : vector<8x8xf32>
    %c8_i32_95 = arith.constant 8 : i32
    %291 = vector.broadcast %c8_i32_95 : i32 to vector<8x8xi32>
    %292 = arith.select %290, %288, %291 : vector<8x8xi1>, vector<8x8xi32>
    %cst_96 = arith.constant dense<2147483647> : vector<8xi32>
    %293 = vector.multi_reduction <minsi>, %292, %cst_96 [1] : vector<8x8xi32> to vector<8xi32>
    %294 = vector.shape_cast %293 : vector<8xi32> to vector<8x1xi32>
    %295 = vector.broadcast %294 : vector<8x1xi32> to vector<8x8xi32>
    %296 = arith.cmpi eq, %288, %295 : vector<8x8xi32>
    %297 = arith.extui %296 : vector<8x8xi1> to vector<8x8xi32>
    %298 = arith.sitofp %297 : vector<8x8xi32> to vector<8x8xf32>
    %299 = arith.truncf %298 : vector<8x8xf32> to vector<8x8xbf16>
    %300 = vector.extract_strided_slice %218 {offsets = [6, 0], sizes = [8, 8], strides = [1, 1]} : vector<14x8xbf16> to vector<8x8xbf16>
    %cst_97 = arith.constant dense<0.000000e+00> : vector<8x8xf32>
    %301 = tpu.matmul %299, %300, %cst_97 {dimension_numbers = #tpu.dot_dimension_numbers<[1], [0], [0], [1], [0, 0, 1, 1], [], []>} : vector<8x8xbf16>, vector<8x8xbf16>, vector<8x8xf32> -> vector<8x8xf32>
    %302 = arith.maximumf %270, %301 : vector<8x8xf32>
    %303 = vector.broadcast %287 : vector<8x1xf32> to vector<8x8xf32>
    %304 = arith.subf %285, %303 : vector<8x8xf32>
    %305 = math.exp %304 : vector<8x8xf32>
    %cst_98 = arith.constant dense<0.000000e+00> : vector<8xf32>
    %306 = vector.multi_reduction <add>, %305, %cst_98 [1] : vector<8x8xf32> to vector<8xf32>
    %307 = vector.shape_cast %306 : vector<8xf32> to vector<8x1xf32>
    %308 = vector.broadcast %307 : vector<8x1xf32> to vector<8x8xf32>
    %309 = arith.divf %305, %308 : vector<8x8xf32>
    %310 = vector.broadcast %7 : vector<8x1xf32> to vector<8x8xf32>
    %311 = arith.mulf %309, %310 : vector<8x8xf32>
    %cst_99 = arith.constant dense<0.000000e+00> : vector<8xf32>
    %312 = vector.multi_reduction <add>, %311, %cst_99 [0] : vector<8x8xf32> to vector<8xf32>
    %313 = vector.shape_cast %312 : vector<8xf32> to vector<1x8xf32>
    %c0_100 = arith.constant 0 : index
    %c2_101 = arith.constant 2 : index
    %c6_102 = arith.constant 6 : index
    %314 = vector.load %arg5[%c0_100, %c2_101, %c6_102] : memref<1x4x14xf32, #tpu.memory_space<vmem>>, vector<1x1x8xf32>
    %315 = vector.shape_cast %314 : vector<1x1x8xf32> to vector<1x8xf32>
    %316 = vector.shape_cast %313 : vector<1x8xf32> to vector<1x1x8xf32>
    tpu.vector_store %arg5[%c0_100, %c2_101, %c6_102], %316 {strides = array<i32>} : memref<1x4x14xf32, #tpu.memory_space<vmem>>, vector<1x1x8xf32>,
    %c0_103 = arith.constant 0 : index
    %c24 = arith.constant 24 : index
    %317 = vector.load %arg1[%c0_103, %c24] : memref<8x32xbf16, #tpu.memory_space<vmem>>, vector<8x8xbf16>
    %c3 = arith.constant 3 : index
    %c0_104 = arith.constant 0 : index
    %c0_105 = arith.constant 0 : index
    %318 = vector.load %arg2[%c3, %c0_104, %c0_105] : memref<4x8x14xbf16, #tpu.memory_space<vmem>>, vector<1x8x14xbf16>
    %319 = vector.shape_cast %318 : vector<1x8x14xbf16> to vector<8x14xbf16>
    %c3_106 = arith.constant 3 : index
    %c0_107 = arith.constant 0 : index
    %c0_108 = arith.constant 0 : index
    %320 = vector.load %arg3[%c3_106, %c0_107, %c0_108] : memref<4x14x8xbf16, #tpu.memory_space<vmem>>, vector<1x14x8xbf16>
    %321 = vector.shape_cast %320 : vector<1x14x8xbf16> to vector<14x8xbf16>
    %cst_109 = arith.constant dense<0.000000e+00> : vector<8x14xf32>
    %322 = tpu.matmul %317, %319, %cst_109 {dimension_numbers = #tpu.dot_dimension_numbers<[1], [0], [0], [1], [0, 0, 1, 1], [], []>} : vector<8x8xbf16>, vector<8x14xbf16>, vector<8x14xf32> -> vector<8x14xf32>
    %cst_110 = arith.constant 1.000000e+00 : f32
    %323 = vector.broadcast %cst_110 : f32 to vector<8x14xf32>
    %324 = arith.mulf %322, %323 : vector<8x14xf32>
    %325 = vector.extract_strided_slice %324 {offsets = [0, 0], sizes = [8, 2], strides = [1, 1]} : vector<8x14xf32> to vector<8x2xf32>
    %cst_111 = arith.constant dense<0xFF800000> : vector<8xf32>
    %326 = vector.multi_reduction <maximumf>, %325, %cst_111 [1] : vector<8x2xf32> to vector<8xf32>
    %327 = vector.shape_cast %326 : vector<8xf32> to vector<8x1xf32>
    %328 = tpu.iota {dimensions = array<i32: 1>} : vector<8x2xi32>
    %329 = vector.broadcast %327 : vector<8x1xf32> to vector<8x2xf32>
    %330 = arith.cmpf oge, %325, %329 : vector<8x2xf32>
    %c2_i32_112 = arith.constant 2 : i32
    %331 = vector.broadcast %c2_i32_112 : i32 to vector<8x2xi32>
    %332 = arith.select %330, %328, %331 : vector<8x2xi1>, vector<8x2xi32>
    %cst_113 = arith.constant dense<2147483647> : vector<8xi32>
    %333 = vector.multi_reduction <minsi>, %332, %cst_113 [1] : vector<8x2xi32> to vector<8xi32>
    %334 = vector.shape_cast %333 : vector<8xi32> to vector<8x1xi32>
    %335 = vector.broadcast %334 : vector<8x1xi32> to vector<8x2xi32>
    %336 = arith.cmpi eq, %328, %335 : vector<8x2xi32>
    %337 = arith.extui %336 : vector<8x2xi1> to vector<8x2xi32>
    %338 = arith.sitofp %337 : vector<8x2xi32> to vector<8x2xf32>
    %339 = arith.truncf %338 : vector<8x2xf32> to vector<8x2xbf16>
    %340 = vector.extract_strided_slice %321 {offsets = [0, 0], sizes = [2, 8], strides = [1, 1]} : vector<14x8xbf16> to vector<2x8xbf16>
    %cst_114 = arith.constant dense<0.000000e+00> : vector<8x8xf32>
    %341 = tpu.matmul %339, %340, %cst_114 {dimension_numbers = #tpu.dot_dimension_numbers<[1], [0], [0], [1], [0, 0, 1, 1], [], []>} : vector<8x2xbf16>, vector<2x8xbf16>, vector<8x8xf32> -> vector<8x8xf32>
    %342 = vector.broadcast %327 : vector<8x1xf32> to vector<8x2xf32>
    %343 = arith.subf %325, %342 : vector<8x2xf32>
    %344 = math.exp %343 : vector<8x2xf32>
    %cst_115 = arith.constant dense<0.000000e+00> : vector<8xf32>
    %345 = vector.multi_reduction <add>, %344, %cst_115 [1] : vector<8x2xf32> to vector<8xf32>
    %346 = vector.shape_cast %345 : vector<8xf32> to vector<8x1xf32>
    %347 = vector.broadcast %346 : vector<8x1xf32> to vector<8x2xf32>
    %348 = arith.divf %344, %347 : vector<8x2xf32>
    %349 = vector.broadcast %7 : vector<8x1xf32> to vector<8x2xf32>
    %350 = arith.mulf %348, %349 : vector<8x2xf32>
    %cst_116 = arith.constant dense<0.000000e+00> : vector<2xf32>
    %351 = vector.multi_reduction <add>, %350, %cst_116 [0] : vector<8x2xf32> to vector<2xf32>
    %352 = vector.shape_cast %351 : vector<2xf32> to vector<1x2xf32>
    %c0_117 = arith.constant 0 : index
    %c3_118 = arith.constant 3 : index
    %c0_119 = arith.constant 0 : index
    %353 = vector.load %arg5[%c0_117, %c3_118, %c0_119] : memref<1x4x14xf32, #tpu.memory_space<vmem>>, vector<1x1x2xf32>
    %354 = vector.shape_cast %353 : vector<1x1x2xf32> to vector<1x2xf32>
    %355 = vector.shape_cast %352 : vector<1x2xf32> to vector<1x1x2xf32>
    tpu.vector_store %arg5[%c0_117, %c3_118, %c0_119], %355 {strides = array<i32>} : memref<1x4x14xf32, #tpu.memory_space<vmem>>, vector<1x1x2xf32>,
    %356 = vector.extract_strided_slice %324 {offsets = [0, 2], sizes = [8, 4], strides = [1, 1]} : vector<8x14xf32> to vector<8x4xf32>
    %cst_120 = arith.constant dense<0xFF800000> : vector<8xf32>
    %357 = vector.multi_reduction <maximumf>, %356, %cst_120 [1] : vector<8x4xf32> to vector<8xf32>
    %358 = vector.shape_cast %357 : vector<8xf32> to vector<8x1xf32>
    %359 = tpu.iota {dimensions = array<i32: 1>} : vector<8x4xi32>
    %360 = vector.broadcast %358 : vector<8x1xf32> to vector<8x4xf32>
    %361 = arith.cmpf oge, %356, %360 : vector<8x4xf32>
    %c4_i32_121 = arith.constant 4 : i32
    %362 = vector.broadcast %c4_i32_121 : i32 to vector<8x4xi32>
    %363 = arith.select %361, %359, %362 : vector<8x4xi1>, vector<8x4xi32>
    %cst_122 = arith.constant dense<2147483647> : vector<8xi32>
    %364 = vector.multi_reduction <minsi>, %363, %cst_122 [1] : vector<8x4xi32> to vector<8xi32>
    %365 = vector.shape_cast %364 : vector<8xi32> to vector<8x1xi32>
    %366 = vector.broadcast %365 : vector<8x1xi32> to vector<8x4xi32>
    %367 = arith.cmpi eq, %359, %366 : vector<8x4xi32>
    %368 = arith.extui %367 : vector<8x4xi1> to vector<8x4xi32>
    %369 = arith.sitofp %368 : vector<8x4xi32> to vector<8x4xf32>
    %370 = arith.truncf %369 : vector<8x4xf32> to vector<8x4xbf16>
    %371 = vector.extract_strided_slice %321 {offsets = [2, 0], sizes = [4, 8], strides = [1, 1]} : vector<14x8xbf16> to vector<4x8xbf16>
    %cst_123 = arith.constant dense<0.000000e+00> : vector<8x8xf32>
    %372 = tpu.matmul %370, %371, %cst_123 {dimension_numbers = #tpu.dot_dimension_numbers<[1], [0], [0], [1], [0, 0, 1, 1], [], []>} : vector<8x4xbf16>, vector<4x8xbf16>, vector<8x8xf32> -> vector<8x8xf32>
    %373 = arith.maximumf %341, %372 : vector<8x8xf32>
    %374 = vector.broadcast %358 : vector<8x1xf32> to vector<8x4xf32>
    %375 = arith.subf %356, %374 : vector<8x4xf32>
    %376 = math.exp %375 : vector<8x4xf32>
    %cst_124 = arith.constant dense<0.000000e+00> : vector<8xf32>
    %377 = vector.multi_reduction <add>, %376, %cst_124 [1] : vector<8x4xf32> to vector<8xf32>
    %378 = vector.shape_cast %377 : vector<8xf32> to vector<8x1xf32>
    %379 = vector.broadcast %378 : vector<8x1xf32> to vector<8x4xf32>
    %380 = arith.divf %376, %379 : vector<8x4xf32>
    %381 = vector.broadcast %7 : vector<8x1xf32> to vector<8x4xf32>
    %382 = arith.mulf %380, %381 : vector<8x4xf32>
    %cst_125 = arith.constant dense<0.000000e+00> : vector<4xf32>
    %383 = vector.multi_reduction <add>, %382, %cst_125 [0] : vector<8x4xf32> to vector<4xf32>
    %384 = vector.shape_cast %383 : vector<4xf32> to vector<1x4xf32>
    %c0_126 = arith.constant 0 : index
    %c3_127 = arith.constant 3 : index
    %c2_128 = arith.constant 2 : index
    %385 = vector.load %arg5[%c0_126, %c3_127, %c2_128] : memref<1x4x14xf32, #tpu.memory_space<vmem>>, vector<1x1x4xf32>
    %386 = vector.shape_cast %385 : vector<1x1x4xf32> to vector<1x4xf32>
    %387 = vector.shape_cast %384 : vector<1x4xf32> to vector<1x1x4xf32>
    tpu.vector_store %arg5[%c0_126, %c3_127, %c2_128], %387 {strides = array<i32>} : memref<1x4x14xf32, #tpu.memory_space<vmem>>, vector<1x1x4xf32>,
    %388 = vector.extract_strided_slice %324 {offsets = [0, 6], sizes = [8, 8], strides = [1, 1]} : vector<8x14xf32> to vector<8x8xf32>
    %cst_129 = arith.constant dense<0xFF800000> : vector<8xf32>
    %389 = vector.multi_reduction <maximumf>, %388, %cst_129 [1] : vector<8x8xf32> to vector<8xf32>
    %390 = vector.shape_cast %389 : vector<8xf32> to vector<8x1xf32>
    %391 = tpu.iota {dimensions = array<i32: 1>} : vector<8x8xi32>
    %392 = vector.broadcast %390 : vector<8x1xf32> to vector<8x8xf32>
    %393 = arith.cmpf oge, %388, %392 : vector<8x8xf32>
    %c8_i32_130 = arith.constant 8 : i32
    %394 = vector.broadcast %c8_i32_130 : i32 to vector<8x8xi32>
    %395 = arith.select %393, %391, %394 : vector<8x8xi1>, vector<8x8xi32>
    %cst_131 = arith.constant dense<2147483647> : vector<8xi32>
    %396 = vector.multi_reduction <minsi>, %395, %cst_131 [1] : vector<8x8xi32> to vector<8xi32>
    %397 = vector.shape_cast %396 : vector<8xi32> to vector<8x1xi32>
    %398 = vector.broadcast %397 : vector<8x1xi32> to vector<8x8xi32>
    %399 = arith.cmpi eq, %391, %398 : vector<8x8xi32>
    %400 = arith.extui %399 : vector<8x8xi1> to vector<8x8xi32>
    %401 = arith.sitofp %400 : vector<8x8xi32> to vector<8x8xf32>
    %402 = arith.truncf %401 : vector<8x8xf32> to vector<8x8xbf16>
    %403 = vector.extract_strided_slice %321 {offsets = [6, 0], sizes = [8, 8], strides = [1, 1]} : vector<14x8xbf16> to vector<8x8xbf16>
    %cst_132 = arith.constant dense<0.000000e+00> : vector<8x8xf32>
    %404 = tpu.matmul %402, %403, %cst_132 {dimension_numbers = #tpu.dot_dimension_numbers<[1], [0], [0], [1], [0, 0, 1, 1], [], []>} : vector<8x8xbf16>, vector<8x8xbf16>, vector<8x8xf32> -> vector<8x8xf32>
    %405 = arith.maximumf %373, %404 : vector<8x8xf32>
    %406 = vector.broadcast %390 : vector<8x1xf32> to vector<8x8xf32>
    %407 = arith.subf %388, %406 : vector<8x8xf32>
    %408 = math.exp %407 : vector<8x8xf32>
    %cst_133 = arith.constant dense<0.000000e+00> : vector<8xf32>
    %409 = vector.multi_reduction <add>, %408, %cst_133 [1] : vector<8x8xf32> to vector<8xf32>
    %410 = vector.shape_cast %409 : vector<8xf32> to vector<8x1xf32>
    %411 = vector.broadcast %410 : vector<8x1xf32> to vector<8x8xf32>
    %412 = arith.divf %408, %411 : vector<8x8xf32>
    %413 = vector.broadcast %7 : vector<8x1xf32> to vector<8x8xf32>
    %414 = arith.mulf %412, %413 : vector<8x8xf32>
    %cst_134 = arith.constant dense<0.000000e+00> : vector<8xf32>
    %415 = vector.multi_reduction <add>, %414, %cst_134 [0] : vector<8x8xf32> to vector<8xf32>
    %416 = vector.shape_cast %415 : vector<8xf32> to vector<1x8xf32>
    %c0_135 = arith.constant 0 : index
    %c3_136 = arith.constant 3 : index
    %c6_137 = arith.constant 6 : index
    %417 = vector.load %arg5[%c0_135, %c3_136, %c6_137] : memref<1x4x14xf32, #tpu.memory_space<vmem>>, vector<1x1x8xf32>
    %418 = vector.shape_cast %417 : vector<1x1x8xf32> to vector<1x8xf32>
    %419 = vector.shape_cast %416 : vector<1x8xf32> to vector<1x1x8xf32>
    tpu.vector_store %arg5[%c0_135, %c3_136, %c6_137], %419 {strides = array<i32>} : memref<1x4x14xf32, #tpu.memory_space<vmem>>, vector<1x1x8xf32>,
    %420 = tpu.concatenate %96, %199, %302, %405 in 1 : vector<8x8xf32>, vector<8x8xf32>, vector<8x8xf32>, vector<8x8xf32> -> vector<8x32xf32>
    %c0_138 = arith.constant 0 : index
    %c0_139 = arith.constant 0 : index
    %421 = vector.load %arg4[%c0_138, %c0_139] : memref<8x32xf32, #tpu.memory_space<vmem>>, vector<8x32xf32>
    tpu.vector_store %arg4[%c0_138, %c0_139], %420 {strides = array<i32>} : memref<8x32xf32, #tpu.memory_space<vmem>>, vector<8x32xf32>,
    return
  }
  func.func @transform_0(%arg0: i32) -> (i32, i32) {
    %c0_i32 = arith.constant 0 : i32
    %c0_i32_0 = arith.constant 0 : i32
    return %arg0, %c0_i32 : i32, i32
  }
  func.func @transform_1(%arg0: i32) -> (i32, i32, i32) {
    %c0_i32 = arith.constant 0 : i32
    %c0_i32_0 = arith.constant 0 : i32
    %c0_i32_1 = arith.constant 0 : i32
    %c0_i32_2 = arith.constant 0 : i32
    return %c0_i32, %c0_i32_0, %c0_i32_1 : i32, i32, i32
  }
  func.func @transform_2(%arg0: i32) -> (i32, i32, i32) {
    %c0_i32 = arith.constant 0 : i32
    %c0_i32_0 = arith.constant 0 : i32
    %c0_i32_1 = arith.constant 0 : i32
    %c0_i32_2 = arith.constant 0 : i32
    return %c0_i32, %c0_i32_0, %c0_i32_1 : i32, i32, i32
  }
  func.func @transform_3(%arg0: i32) -> (i32, i32) {
    %c0_i32 = arith.constant 0 : i32
    %c0_i32_0 = arith.constant 0 : i32
    return %arg0, %c0_i32 : i32, i32
  }
  func.func @transform_4(%arg0: i32) -> (i32, i32, i32) {
    %c0_i32 = arith.constant 0 : i32
    %c0_i32_0 = arith.constant 0 : i32
    %c0_i32_1 = arith.constant 0 : i32
    return %arg0, %c0_i32, %c0_i32_0 : i32, i32, i32
  }
}

</mosaic_0001>

<bundles_post_ra>
// kernel: tpu_custom_call.1
= control target key start
LH: loop header
LB: loop body
LE: loop exit
PB: predicated region body
PF: predicated region fallthrough
CT: control target
= control target key end

     0   :  { %10 = vsyncpa [#allocation3], 0  ;;  %vm35_vm0 = vcmask 1043456   ;;  %v1725_v1 = vmov 0.0   ;;  %vm1726_vm1 = vmmov 0   ;;  %vm31_vm2 = vcmask 64512   ;;  %s2277_s0 = inlined_call_operand.vmem [shape: bf16[8,32], index: 0, kind: input, shape index: {}]   ;;  %s2278_s1 = inlined_call_operand.vmem [shape: bf16[4,8,14], index: 1, kind: input, shape index: {}]   ;;  %s2279_s2 = inlined_call_operand.vmem [shape: bf16[4,14,8], index: 2, kind: input, shape index: {}]   ;;  %s2280_s3 = inlined_call_operand.hbm [shape: f32[8,32], index: 3, kind: output, shape index: {0}]   ;;  %s2281_s4 = inlined_call_operand.hbm [shape: f32[1,4,14], index: 4, kind: output, shape index: {1}]  }
   0x1   :  { %v28_v0 = vld [vmem:[%s2278_s1] sm:$0xf]  ;;  %1508 = vmatprep.subr.bf16.mxu0 %v1725_v1  ;;  %1510 = vmatprep.mubr.msk.bf16.mxu0 %vm1726_vm1, %v1725_v1 }
   0x2   :  { %v37_v2 = vsel %vm35_vm0, %v28_v0, 0  ;;  %v27_v3 = vld [vmem:[%s2277_s0] sm:$0xf]  ;;  %1514 = vmatprep.subr.bf16.mxu1 %v1725_v1 }
   0x3   :  { %1509 = vmatpush3.bf16.msra.mxu0 %v37_v2 }
   0x4   :  { %11 = vsyncpa [#allocation5], 0  ;;  %1520 = vmatprep.subr.bf16.mxu0 %v1725_v1  ;;  %1516 = vmatprep.mubr.msk.bf16.mxu1 %vm1726_vm1, %v1725_v1  ;;  %vm171_vm3 = vcmask 48144   ;;  %v83_v9 = vlaneseq  ;;  %s1727_s19 = smov 2   ;;  %v1618_v22 = vld [vmem:[%s2277_s0] ss:$0 sps:$4 sm:$0xff]  }
   0x5   :  { %v1804_v23 = vld [vmem:[%s2279_s2] sm:$0xf]  ;;  %s1728_s24 = smov 120   ;;  %vm206_vm6 = vcmask 1041408   ;;  %v1437_v32 = vld [vmem:[%s2278_s1 + $0x4] sm:$0xf] }
   0x6   :  { %1511 = vmatmul.mubr.msk.bf16.vlgmr.msra.gmra.mrb[0].mxu0 %vm31_vm2, %v27_v3  ;;  %v1785_v10 = vand.u32 127, %v83_v9  ;;  %v1432_v24 = vcombine.low %v1804_v23, %v1804_v23  ;;  %vm202_vm8 = vcmask 31744   ;;  %v388_v35 = vsel %vm35_vm0, %v1437_v32, 0  ;;  %v1838_v55 = vld [vmem:[%s2279_s2 + $0x8] sm:$0xf]  ;;  %s1729_s5 = smov 112  }
   0x7   :  { %1522 = vmatprep.mubr.msk.bf16.mxu0 %vm1726_vm1, %v1725_v1  ;;  %v1445_v56 = vcombine.low %v1838_v55, %v1838_v55  ;;  %v1620_v58 = vld [vmem:[%s2277_s0] ss:$0 sps:$4 sm:$0xff]   ;;  %vm79_vm11 = vcmask 15360   ;;  %s1730_s8 = smov 6   ;;  %s1731_s13 = smov 104   ;;  %vm273_vm15 = vcmask 113712  }
   0x8   :  { %v201_v25 = vrot.slane %v1432_v24, 1  ;;  %s1732_s20 = smov 126   ;;  %s1734_s25 = smov 8  }
   0x9   :  { %v544_v57 = vrot.slane %v1445_v56, 1  ;;  %s1735_s26 = smov 24   ;;  %s1736_s27 = smov 16  }
   0xa   :  { %v208_v26 = vsel %vm206_vm6, %v201_v25, 0  ;;  %s1737_s28 = smov [#allocation2]  }
   0xb   :  { %1521 = vmatpush3.bf16.msra.mxu0 %v208_v26  ;;  %v549_v59 = vsel %vm206_vm6, %v544_v57, 0  ;;  %s1406_s29 = sshll.u32 %s1737_s28, 4  ;;  %s1407_s29 = int_to_ptr.vmem [resolvable:$true] %s1406_s29 }
   0xc   :  { %1532 = vmatprep.subr.bf16.mxu0 %v1725_v1  ;;  %s1677_s30 = scalar_lea.vmem %s1407_s29, 128  ;;  %p1682_p1 = scmp.lt.s32.totalorder %s1407_s29, %s1407_s29 }
   0xd   :  { %p1678_p0 = scmp.ne.s32.totalorder %s1407_s29, %s1677_s30  ;;  %p1683_p2 = scmp.lt.s32.totalorder %s1677_s30, %s1677_s30 }
   0xf   :  { %p1684_p3 = por %p1683_p2, %p1682_p1 }
  0x11   :  { %p1685_p4 = pnand %p1684_p3, %p1678_p0 }
  0xd9   :  { %v1781_v4 = vpop.f32.mrb[0].mxu0 }
  0xda   :  { %v1512_v5 = vpop.f32.mrb[1].mxu0  ;;  %v172_v6 = vsel %vm171_vm3, %v1781_v4, -inf  ;;  %v80_v60 = vsel %vm79_vm11, %v1781_v4, -inf }
  0xdb   :  { %173 = vmax.xlane.f32.xlu0 %v172_v6  ;;  %v76_v7 = vpop.f32.mrb[2].mxu0  ;;  %v1450_v5 = vld [vmem:[%s2278_s1 + $0x8] sm:$0xf] }
  0xdc   :  { %v1513_v8 = vpop.f32.mrb[3].mxu0 }
  0xdd   :  { %v724_v8 = vsel %vm35_vm0, %v1450_v5, 0 }
  0xf1   :  { %176 = vrot.lane.b32.xlu0 %v1785_v10, %s1727_s19 }
 0x168   :  { %v1788_v11 = vpop.xlane.xlu0 %173 }
 0x169   :  { %v251_v12 = vsub.f32 %v1781_v4, %v1788_v11  ;;  %vm175_vm4 = vcmp.ge.f32.partialorder %v1781_v4, %v1788_v11 }
 0x16c   :  { %v1794_v13 = vpop.permute.xlu0 %176 }
 0x16d   :  { %v178_v14 = vsel %vm175_vm4, %v1794_v13, 4 }
 0x16e   :  { %v179_v15 = vsel %vm171_vm3, %v178_v14, 2147483647 }
 0x16f   :  { %v181_v16 = vshra.s32 %v179_v15, 16  ;;  %v180_v18 = vand.u32 65535, %v179_v15 }
 0x171   :  { %v183_v17 = vcvt.s32.f32 %v181_v16  ;;  %v182_v20 = vcvt.s32.f32 %v180_v18 }
 0x173   :  { %184 = vmin.xlane.f32.xlu1 %v183_v17 }
 0x200   :  { %v185_v19 = vpop.xlane.xlu1 %184 }
 0x201   :  { %vm186_vm5 = vcmp.eq.f32.partialorder %v183_v17, %v185_v19  ;;  %v191_v27 = vcvt.f32.s32 %v185_v19 }
 0x202   :  { %v187_v21 = vsel %vm186_vm5, %v182_v20, inf }
 0x203   :  { %188 = vmin.xlane.f32.xlu1 %v187_v21  ;;  %v192_v29 = vshll.u32 %v191_v27, 16 }
 0x214   :  { %382 = vrot.lane.b32.xlu1 %v1618_v22, %s1728_s24 }
 0x290   :  { %v189_v28 = vpop.xlane.xlu1 %188 }
 0x291   :  { %v190_v30 = vcvt.f32.s32 %v189_v28 }
 0x293   :  { %v193_v31 = vadd.s32 %v192_v29, %v190_v30 }
 0x294   :  { %v383_v36 = vpop.permute.xlu1 %382 }
 0x295   :  { %vm194_vm7 = vcmp.eq.s32.totalorder %v1785_v10, %v193_v31 }
 0x296   :  { %v1431_v33 = vsel %vm194_vm7, 1.0, %v1725_v1 }
 0x297   :  { %v197_v34 = vpack.c.bf16 %v1431_v33, %v1431_v33 }
 0x299   :  { %1523 = vmatmul.mubr.msk.bf16.vlgmr.msra.gmra.mrb[4].mxu0 %vm202_vm8, %v197_v34 }
 0x29a   :  { %1533 = vmatpush3.bf16.msra.mxu0 %v388_v35  ;;  %1534 = vmatprep.mubr.msk.bf16.mxu0 %vm1726_vm1, %v1725_v1  ;;  %v1622_v35 = vld [vmem:[%s2277_s0] ss:$0 sps:$4 sm:$0xff]  }
 0x29b   :  { %1544 = vmatprep.subr.bf16.mxu0 %v1725_v1 }
 0x2a1   :  { %1535 = vmatmul.mubr.msk.bf16.vlgmr.msra.gmra.mrb[8].mxu0 %vm31_vm2, %v383_v36  ;;  %v1887_v36 = vld [vmem:[%s2279_s2 + $0x10] sm:$0xf] }
 0x2a2   :  { %1546 = vmatprep.mubr.msk.bf16.mxu0 %vm1726_vm1, %v1725_v1  ;;  %1545 = vmatpush3.bf16.msra.mxu0 %v549_v59 }
 0x2a3   :  { %1556 = vmatprep.subr.bf16.mxu0 %v1725_v1 }
 0x36c   :  { %v1823_v37 = vpop.f32.mrb[4].mxu0 }
 0x36d   :  { %v1524_v38 = vpop.f32.mrb[5].mxu0 }
 0x36e   :  { %v247_v39 = vpop.f32.mrb[6].mxu0  ;;  %v1458_v38 = vcombine.low %v1887_v36, %v1887_v36 }
 0x36f   :  { %v1525_v40 = vpop.f32.mrb[7].mxu0 }
 0x370   :  { %v880_v39 = vrot.slane %v1458_v38, 1 }
 0x372   :  { %v885_v40 = vsel %vm206_vm6, %v880_v39, 0 }
 0x374   :  { %v1825_v41 = vpop.f32.mrb[8].mxu0 }
 0x375   :  { %v1536_v42 = vpop.f32.mrb[9].mxu0  ;;  %v517_v43 = vsel %vm171_vm3, %v1825_v41, -inf  ;;  %v430_v61 = vsel %vm79_vm11, %v1825_v41, -inf }
 0x376   :  { %518 = vmax.xlane.f32.xlu1 %v517_v43  ;;  %v427_v44 = vpop.f32.mrb[10].mxu0  ;;  %v274_v42 = vsel %vm273_vm15, %v1781_v4, -inf  ;;  %v613_v43 = vsel %vm273_vm15, %v1825_v41, -inf }
 0x377   :  { %v1537_v45 = vpop.f32.mrb[11].mxu0 }
 0x403   :  { %v1829_v46 = vpop.xlane.xlu1 %518 }
 0x404   :  { %vm520_vm9 = vcmp.ge.f32.partialorder %v1825_v41, %v1829_v46 }
 0x405   :  { %v521_v47 = vsel %vm520_vm9, %v1794_v13, 4 }
 0x406   :  { %v522_v48 = vsel %vm171_vm3, %v521_v47, 2147483647 }
 0x407   :  { %v524_v49 = vshra.s32 %v522_v48, 16  ;;  %v523_v51 = vand.u32 65535, %v522_v48 }
 0x409   :  { %v526_v50 = vcvt.s32.f32 %v524_v49  ;;  %v525_v53 = vcvt.s32.f32 %v523_v51 }
 0x40b   :  { %527 = vmin.xlane.f32.xlu0 %v526_v50 }
 0x498   :  { %v528_v52 = vpop.xlane.xlu0 %527 }
 0x499   :  { %vm529_vm10 = vcmp.eq.f32.partialorder %v526_v50, %v528_v52  ;;  %v534_v62 = vcvt.f32.s32 %v528_v52  ;;  %v1463_v52 = vld [vmem:[%s2278_s1 + $0xc] sm:$0xf] }
 0x49a   :  { %v530_v54 = vsel %vm529_vm10, %v525_v53, inf  ;;  %v1060_v56 = vsel %vm35_vm0, %v1463_v52, 0 }
 0x49b   :  { %531 = vmin.xlane.f32.xlu0 %v530_v54  ;;  %v535_v0 = vshll.u32 %v534_v62, 16 }
 0x4b1   :  { %718 = vrot.lane.b32.xlu0 %v1620_v58, %s1729_s5 }
 0x4d0   :  { %81 = vmax.xlane.f32.xlu0 %v80_v60 }
 0x4d4   :  { %431 = vmax.xlane.f32.xlu0 %v430_v61 }
 0x4ea   :  { %278 = vrot.lane.b32.xlu0 %v1785_v10, %s1730_s8 }
 0x528   :  { %v532_v63 = vpop.xlane.xlu0 %531 }
 0x529   :  { %v533_v2 = vcvt.f32.s32 %v532_v63 }
 0x52b   :  { %v536_v3 = vadd.s32 %v535_v0, %v533_v2 }
 0x52c   :  { %v719_v9 = vpop.permute.xlu0 %718 }
 0x52d   :  { %vm537_vm12 = vcmp.eq.s32.totalorder %v1785_v10, %v536_v3 }
 0x52e   :  { %v1444_v6 = vsel %vm537_vm12, 1.0, %v1725_v1 }
 0x52f   :  { %v540_v7 = vpack.c.bf16 %v1444_v6, %v1444_v6 }
 0x531   :  { %1547 = vmatmul.mubr.msk.bf16.vlgmr.msra.gmra.mrb[12].mxu0 %vm202_vm8, %v540_v7 }
 0x532   :  { %1557 = vmatpush3.bf16.msra.mxu0 %v724_v8  ;;  %1558 = vmatprep.mubr.msk.bf16.mxu0 %vm1726_vm1, %v1725_v1 }
 0x533   :  { %1568 = vmatprep.subr.bf16.mxu0 %v1725_v1 }
 0x539   :  { %1559 = vmatmul.mubr.msk.bf16.vlgmr.msra.gmra.mrb[16].mxu0 %vm31_vm2, %v719_v9 }
 0x53a   :  { %1570 = vmatprep.mubr.msk.bf16.mxu0 %vm1726_vm1, %v1725_v1  ;;  %1569 = vmatpush3.bf16.msra.mxu0 %v885_v40 }
 0x53b   :  { %1580 = vmatprep.subr.bf16.mxu0 %v1725_v1 }
 0x55d   :  { %v1864_v14 = vpop.xlane.xlu0 %81 }
 0x55e   :  { %v153_v15 = vsub.f32 %v1781_v4, %v1864_v14  ;;  %vm85_vm5 = vcmp.ge.f32.partialorder %v1781_v4, %v1864_v14 }
 0x55f   :  { %v86_v7 = vsel %vm85_vm5, %v1785_v10, 2 }
 0x561   :  { %v1930_v5 = vpop.xlane.xlu0 %431 }
 0x562   :  { %vm433_vm9 = vcmp.ge.f32.partialorder %v1825_v41, %v1930_v5 }
 0x565   :  { %v279_v8 = vpop.permute.xlu0 %278 }
 0x604   :  { %v1868_v16 = vpop.f32.mrb[12].mxu0 }
 0x605   :  { %v1548_v17 = vpop.f32.mrb[13].mxu0 }
 0x606   :  { %v588_v18 = vpop.f32.mrb[14].mxu0 }
 0x607   :  { %v1549_v19 = vpop.f32.mrb[15].mxu0 }
 0x60c   :  { %v1870_v20 = vpop.f32.mrb[16].mxu0 }
 0x60d   :  { %v1560_v21 = vpop.f32.mrb[17].mxu0  ;;  %v853_v22 = vsel %vm171_vm3, %v1870_v20, -inf  ;;  %v766_v44 = vsel %vm79_vm11, %v1870_v20, -inf  ;;  %v949_v45 = vsel %vm273_vm15, %v1870_v20, -inf }
 0x60e   :  { %854 = vmax.xlane.f32.xlu1 %v853_v22  ;;  %v763_v24 = vpop.f32.mrb[18].mxu0  ;;  %v87_v21 = vsel %vm79_vm11, %v86_v7, 2147483647 }
 0x60f   :  { %v1561_v25 = vpop.f32.mrb[19].mxu0 }
 0x69b   :  { %v1874_v26 = vpop.xlane.xlu1 %854 }
 0x69c   :  { %vm856_vm13 = vcmp.ge.f32.partialorder %v1870_v20, %v1874_v26 }
 0x69d   :  { %v857_v27 = vsel %vm856_vm13, %v1794_v13, 4 }
 0x69e   :  { %v858_v28 = vsel %vm171_vm3, %v857_v27, 2147483647  ;;  %v89_v27 = vshra.s32 %v87_v21, 16 }
 0x69f   :  { %v860_v29 = vshra.s32 %v858_v28, 16  ;;  %v859_v31 = vand.u32 65535, %v858_v28 }
 0x6a1   :  { %v862_v30 = vcvt.s32.f32 %v860_v29  ;;  %v861_v33 = vcvt.s32.f32 %v859_v31  ;;  %v91_v31 = vcvt.s32.f32 %v89_v27 }
 0x6a3   :  { %863 = vmin.xlane.f32.xlu1 %v862_v30 }
 0x730   :  { %v864_v32 = vpop.xlane.xlu1 %863 }
 0x731   :  { %vm865_vm14 = vcmp.eq.f32.partialorder %v862_v30, %v864_v32  ;;  %v870_v47 = vcvt.f32.s32 %v864_v32  ;;  %v434_v30 = vsel %vm433_vm9, %v1785_v10, 2 }
 0x732   :  { %v866_v34 = vsel %vm865_vm14, %v861_v33, inf  ;;  %v435_v33 = vsel %vm79_vm11, %v434_v30, 2147483647 }
 0x733   :  { %867 = vmin.xlane.f32.xlu1 %v866_v34  ;;  %v871_v49 = vshll.u32 %v870_v47, 16  ;;  %v437_v39 = vshra.s32 %v435_v33, 16 }
 0x744   :  { %1054 = vrot.lane.b32.xlu1 %v1622_v35, %s1731_s13 }
 0x768   :  { %275 = vmax.xlane.f32.xlu1 %v274_v42 }
 0x76c   :  { %614 = vmax.xlane.f32.xlu1 %v613_v43  ;;  %v439_v43 = vcvt.s32.f32 %v437_v39 }
 0x770   :  { %767 = vmax.xlane.f32.xlu1 %v766_v44 }
 0x774   :  { %950 = vmax.xlane.f32.xlu1 %v949_v45 }
 0x7c0   :  { %v868_v48 = vpop.xlane.xlu1 %867 }
 0x7c1   :  { %v869_v50 = vcvt.f32.s32 %v868_v48 }
 0x7c3   :  { %v872_v51 = vadd.s32 %v871_v49, %v869_v50 }
 0x7c4   :  { %v1055_v57 = vpop.permute.xlu1 %1054 }
 0x7c5   :  { %vm873_vm4 = vcmp.eq.s32.totalorder %v1785_v10, %v872_v51 }
 0x7c6   :  { %v1457_v53 = vsel %vm873_vm4, 1.0, %v1725_v1 }
 0x7c7   :  { %v876_v54 = vpack.c.bf16 %v1457_v53, %v1457_v53 }
 0x7c9   :  { %1571 = vmatmul.mubr.msk.bf16.vlgmr.msra.gmra.mrb[20].mxu0 %vm202_vm8, %v876_v54 }
 0x7ca   :  { %1581 = vmatpush3.bf16.msra.mxu0 %v1060_v56  ;;  %1582 = vmatprep.mubr.msk.bf16.mxu0 %vm1726_vm1, %v1725_v1 }
 0x7cb   :  { %1592 = vmatprep.subr.bf16.mxu0 %v1725_v1 }
 0x7d1   :  { %1583 = vmatmul.mubr.msk.bf16.vlgmr.msra.gmra.mrb[24].mxu0 %vm31_vm2, %v1055_v57 }
 0x7d2   :  { %1594 = vmatprep.mubr.msk.bf16.mxu0 %vm1726_vm1, %v1725_v1 }
 0x7f5   :  { %v1914_v58 = vpop.xlane.xlu1 %275 }
 0x7f6   :  { %v351_v59 = vsub.f32 %v1781_v4, %v1914_v58  ;;  %vm277_vm7 = vcmp.ge.f32.partialorder %v1781_v4, %v1914_v58  ;;  %v500_v4 = vsub.f32 %v1825_v41, %v1930_v5 }
 0x7f7   :  { %v280_v24 = vsel %vm277_vm7, %v279_v8, 8 }
 0x7f8   :  { %v281_v29 = vsel %vm273_vm15, %v280_v24, 2147483647  ;;  %v501_v58 = vmul.f32 1.442695, %v500_v4 }
 0x7f9   :  { %v1918_v60 = vpop.xlane.xlu1 %614  ;;  %v283_v32 = vshra.s32 %v281_v29, 16 }
 0x7fa   :  { %v688_v61 = vsub.f32 %v1825_v41, %v1918_v60  ;;  %vm616_vm10 = vcmp.ge.f32.partialorder %v1825_v41, %v1918_v60 }
 0x7fb   :  { %v617_v34 = vsel %vm616_vm10, %v279_v8, 8  ;;  %v285_v38 = vcvt.s32.f32 %v283_v32 }
 0x7fc   :  { %v618_v40 = vsel %vm273_vm15, %v617_v34, 2147483647  ;;  %v282_v34 = vand.u32 65535, %v281_v29  ;;  %v689_v4 = vmul.f32 1.442695, %v688_v61 }
 0x7fd   :  { %v1922_v62 = vpop.xlane.xlu1 %767  ;;  %v620_v44 = vshra.s32 %v618_v40, 16 }
 0x7fe   :  { %v836_v63 = vsub.f32 %v1870_v20, %v1922_v62  ;;  %vm769_vm12 = vcmp.ge.f32.partialorder %v1870_v20, %v1922_v62 }
 0x7ff   :  { %v770_v42 = vsel %vm769_vm12, %v1785_v10, 2  ;;  %v622_v48 = vcvt.s32.f32 %v620_v44  ;;  %v284_v44 = vcvt.s32.f32 %v282_v34 }
 0x800   :  { %v771_v45 = vsel %vm79_vm11, %v770_v42, 2147483647 }
 0x801   :  { %v1953_v35 = vpop.xlane.xlu1 %950  ;;  %v773_v49 = vshra.s32 %v771_v45, 16 }
 0x802   :  { %vm952_vm13 = vcmp.ge.f32.partialorder %v1870_v20, %v1953_v35 }
 0x803   :  { %v953_v47 = vsel %vm952_vm13, %v279_v8, 8  ;;  %v775_v51 = vcvt.s32.f32 %v773_v49 }
 0x804   :  { %v954_v50 = vsel %vm273_vm15, %v953_v47, 2147483647  ;;  %v436_v47 = vand.u32 65535, %v435_v33 }
 0x805   :  { %v956_v52 = vshra.s32 %v954_v50, 16 }
 0x806   :  { %v438_v29 = vcvt.s32.f32 %v436_v47 }
 0x807   :  { %v958_v53 = vcvt.s32.f32 %v956_v52 }
 0x89c   :  { %v1926_v0 = vpop.f32.mrb[20].mxu0 }
 0x89d   :  { %v1572_v2 = vpop.f32.mrb[21].mxu0 }
 0x89e   :  { %v924_v3 = vpop.f32.mrb[22].mxu0 }
 0x89f   :  { %v1573_v6 = vpop.f32.mrb[23].mxu0 }
 0x8a4   :  { %v1935_v9 = vpop.f32.mrb[24].mxu0 }
 0x8a5   :  { %v1584_v17 = vpop.f32.mrb[25].mxu0  ;;  %v1189_v18 = vsel %vm171_vm3, %v1935_v9, -inf  ;;  %v1102_v19 = vsel %vm79_vm11, %v1935_v9, -inf  ;;  %v1285_v28 = vsel %vm273_vm15, %v1935_v9, -inf }
 0x8a6   :  { %1190 = vmax.xlane.f32.xlu0 %v1189_v18  ;;  %1103 = vmax.xlane.f32.xlu1 %v1102_v19  ;;  %v1099_v22 = vpop.f32.mrb[26].mxu0  ;;  %v88_v19 = vand.u32 65535, %v87_v21 }
 0x8a7   :  { %v1585_v25 = vpop.f32.mrb[27].mxu0 }
 0x8a8   :  { %v90_v32 = vcvt.s32.f32 %v88_v19  ;;  %v772_v19 = vand.u32 65535, %v771_v45 }
 0x8aa   :  { %1286 = vmax.xlane.f32.xlu1 %v1285_v28 }
 0x8ae   :  { %92 = vmin.xlane.f32.xlu1 %v91_v31 }
 0x8b2   :  { %286 = vmin.xlane.f32.xlu1 %v285_v38 }
 0x8b6   :  { %440 = vmin.xlane.f32.xlu1 %v439_v43 }
 0x8ba   :  { %623 = vmin.xlane.f32.xlu1 %v622_v48 }
 0x8be   :  { %776 = vmin.xlane.f32.xlu1 %v775_v51 }
 0x8c2   :  { %959 = vmin.xlane.f32.xlu1 %v958_v53 }
 0x933   :  { %v1961_v54 = vpop.xlane.xlu0 %1190  ;;  %v1963_v56 = vpop.xlane.xlu1 %1103 }
 0x934   :  { %vm1192_vm14 = vcmp.ge.f32.partialorder %v1935_v9, %v1961_v54  ;;  %vm1105_vm4 = vcmp.ge.f32.partialorder %v1935_v9, %v1963_v56  ;;  %v1172_v57 = vsub.f32 %v1935_v9, %v1963_v56 }
 0x935   :  { %v1193_v2 = vsel %vm1192_vm14, %v1794_v13, 4  ;;  %v1106_v3 = vsel %vm1105_vm4, %v1785_v10, 2  ;;  %vm109_vm4 = vcmask 1040384  }
 0x936   :  { %v1194_v6 = vsel %vm171_vm3, %v1193_v2, 2147483647  ;;  %v1977_v18 = vsel %vm79_vm11, %v1106_v3, 2147483647  ;;  %v619_v2 = vand.u32 65535, %v618_v40  ;;  %v111_v45 = vsel %vm109_vm4, %v1804_v23, 0 }
 0x937   :  { %v1974_v7 = vpop.xlane.xlu1 %1286  ;;  %v1196_v17 = vshra.s32 %v1194_v6, 16  ;;  %v1109_v24 = vshra.s32 %v1977_v18, 16  ;;  %1515 = vmatpush3.bf16.msra.mxu1 %v111_v45 }
 0x938   :  { %vm1288_vm5 = vcmp.ge.f32.partialorder %v1935_v9, %v1974_v7  ;;  %v1360_v22 = vsub.f32 %v1935_v9, %v1974_v7  ;;  %1526 = vmatprep.subr.bf16.mxu1 %v1725_v1  ;;  %v837_v7 = vmul.f32 1.442695, %v836_v63 }
 0x939   :  { %v1289_v13 = vsel %vm1288_vm5, %v279_v8, 8  ;;  %v1198_v25 = vcvt.s32.f32 %v1196_v17  ;;  %v1984_v27 = vcvt.s32.f32 %v1109_v24  ;;  %v621_v17 = vcvt.s32.f32 %v619_v2 }
 0x93a   :  { %v1987_v28 = vsel %vm273_vm15, %v1289_v13, 2147483647  ;;  %v955_v13 = vand.u32 65535, %v954_v50  ;;  %v1195_v50 = vand.u32 65535, %v1194_v6 }
 0x93b   :  { %1199 = vmin.xlane.f32.xlu0 %v1198_v25  ;;  %v1989_v30 = vpop.xlane.xlu1 %92  ;;  %v1292_v21 = vshra.s32 %v1987_v28, 16  ;;  %1112 = vmin.xlane.f32.xlu1 %v1984_v27  ;;  %v1291_v14 = vand.u32 65535, %v1987_v28 }
 0x93c   :  { %vm94_vm7 = vcmp.eq.f32.partialorder %v91_v31, %v1989_v30 }
 0x93d   :  { %v1994_v39 = vcvt.s32.f32 %v1292_v21  ;;  %v95_v8 = vsel %vm94_vm7, %v90_v32, inf }
 0x93f   :  { %96 = vmin.xlane.f32.xlu0 %v95_v8  ;;  %v1996_v42 = vpop.xlane.xlu1 %286  ;;  %1295 = vmin.xlane.f32.xlu1 %v1994_v39  ;;  %v30_v8 = vld [vmem:[%s2279_s2 + $0x4] sm:$0x7] }
 0x940   :  { %vm288_vm9 = vcmp.eq.f32.partialorder %v285_v38, %v1996_v42  ;;  %v774_v38 = vcvt.s32.f32 %v772_v19  ;;  %v293_v19 = vcvt.f32.s32 %v1996_v42 }
 0x941   :  { %v289_v49 = vsel %vm288_vm9, %v284_v44, inf  ;;  %v99_v44 = vcvt.f32.s32 %v1989_v30 }
 0x943   :  { %v2000_v52 = vpop.xlane.xlu1 %440  ;;  %290 = vmin.xlane.f32.xlu1 %v289_v49  ;;  %v100_v30 = vshll.u32 %v99_v44, 16 }
 0x944   :  { %vm442_vm10 = vcmp.eq.f32.partialorder %v439_v43, %v2000_v52  ;;  %v957_v43 = vcvt.s32.f32 %v955_v13  ;;  %v294_v13 = vshll.u32 %v293_v19, 16  ;;  %v447_v42 = vcvt.f32.s32 %v2000_v52 }
 0x945   :  { %v443_v31 = vsel %vm442_vm10, %v438_v29, inf  ;;  %v1435_v29 = vcombine.low %v1804_v23, %v30_v8  ;;  %v1439_v8 = vld [vmem:[%s2279_s2 + $0xc] sm:$0x7] }
 0x946   :  { %444 = vmin.xlane.f32.xlu0 %v443_v31 }
 0x947   :  { %v2003_v3 = vpop.xlane.xlu1 %623 }
 0x948   :  { %vm625_vm12 = vcmp.eq.f32.partialorder %v622_v48, %v2003_v3  ;;  %v154_v48 = vmul.f32 1.442695, %v153_v15  ;;  %v630_v11 = vcvt.f32.s32 %v2003_v3 }
 0x949   :  { %v626_v33 = vsel %vm625_vm12, %v621_v17, inf }
 0x94a   :  { %627 = vmin.xlane.f32.xlu1 %v626_v33  ;;  %1629 = vpow2.f32 %v154_v48 }
 0x94b   :  { %v2006_v24 = vpop.xlane.xlu1 %776 }
 0x94c   :  { %vm778_vm13 = vcmp.eq.f32.partialorder %v775_v51, %v2006_v24  ;;  %v1108_v51 = vand.u32 65535, %v1977_v18 }
 0x94d   :  { %v779_v40 = vsel %vm778_vm13, %v774_v38, inf  ;;  %v303_v38 = vrot.slane %v1435_v29, 3 }
 0x94e   :  { %780 = vmin.xlane.f32.xlu0 %v779_v40  ;;  %v1110_v49 = vcvt.s32.f32 %v1108_v51  ;;  %v252_v51 = vmul.f32 1.442695, %v251_v12 }
 0x94f   :  { %v2009_v21 = vpop.xlane.xlu1 %959  ;;  %v308_v48 = vsel %vm35_vm0, %v303_v38, 0 }
 0x950   :  { %vm961_vm14 = vcmp.eq.f32.partialorder %v958_v53, %v2009_v21  ;;  %v1197_v53 = vcvt.s32.f32 %v1195_v50  ;;  %1631 = vpow2.f32 %v252_v51 }
 0x951   :  { %v962_v32 = vsel %vm961_vm14, %v957_v43, inf }
 0x952   :  { %963 = vmin.xlane.f32.xlu1 %v962_v32 }
 0x954   :  { %v2031_v6 = vpop.eup %1629 }
 0x955   :  { %v156_v28 = vsel %vm79_vm11, %v2031_v6, 0.0 }
 0x9c8   :  { %v2019_v34 = vpop.xlane.xlu0 %1199  ;;  %v2025_v47 = vpop.xlane.xlu1 %1112 }
 0x9c9   :  { %vm1201_vm5 = vcmp.eq.f32.partialorder %v1198_v25, %v2019_v34  ;;  %vm1114_vm7 = vcmp.eq.f32.partialorder %v1984_v27, %v2025_v47  ;;  %v1293_v25 = vcvt.s32.f32 %v1291_v14  ;;  %v458_v14 = vsel %vm109_vm4, %v1838_v55, 0 }
 0x9ca   :  { %v1202_v15 = vsel %vm1201_vm5, %v1197_v53, inf  ;;  %v1115_v18 = vsel %vm1114_vm7, %v1110_v49, inf  ;;  %v448_v53 = vshll.u32 %v447_v42, 16 }
 0x9cb   :  { %1203 = vmin.xlane.f32.xlu1 %v1202_v15  ;;  %1116 = vmin.xlane.f32.xlu0 %v1115_v18  ;;  %v1448_v15 = vcombine.low %v1838_v55, %v1439_v8  ;;  %v2064_v18 = vld [vmem:[%s2279_s2 + $0x18] sm:$0xf] }
 0x9cc   :  { %v97_v2 = vpop.xlane.xlu0 %96  ;;  %v2034_v17 = vpop.xlane.xlu1 %1295  ;;  %v1471_v29 = vcombine.low %v2064_v18, %v2064_v18 }
 0x9cd   :  { %v98_v31 = vcvt.f32.s32 %v97_v2  ;;  %vm1297_vm9 = vcmp.eq.f32.partialorder %v1994_v39, %v2034_v17  ;;  %v640_v55 = vrot.slane %v1448_v15, 3  ;;  %v1465_v15 = vld [vmem:[%s2279_s2 + $0x1c] sm:$0x7] }
 0x9ce   :  { %v1298_v33 = vsel %vm1297_vm9, %v1293_v25, inf  ;;  %v1216_v3 = vrot.slane %v1471_v29, 1  ;;  %v1119_v29 = vcvt.f32.s32 %v2025_v47 }
 0x9cf   :  { %v101_v27 = vadd.s32 %v100_v30, %v98_v31  ;;  %157 = vadd.xlane.f32.xlu1 %v156_v28  ;;  %1299 = vmin.xlane.f32.xlu0 %v1298_v33  ;;  %v631_v30 = vshll.u32 %v630_v11, 16  ;;  %v645_v38 = vsel %vm35_vm0, %v640_v55, 0 }
 0x9d0   :  { %v291_v23 = vpop.xlane.xlu1 %290  ;;  %v1221_v25 = vsel %vm206_vm6, %v1216_v3, 0  ;;  %v1474_v3 = vcombine.low %v2064_v18, %v1465_v15 }
 0x9d1   :  { %vm102_vm10 = vcmp.eq.s32.totalorder %v1785_v10, %v101_v27  ;;  %v292_v43 = vcvt.f32.s32 %v291_v23  ;;  %1593 = vmatpush3.bf16.msra.mxu0 %v1221_v25  ;;  %v783_v27 = vcvt.f32.s32 %v2006_v24  ;;  %v2077_v23 = vpop.eup %1631  ;;  %v1120_v25 = vshll.u32 %v1119_v29, 16 }
 0x9d2   :  { %v1429_v40 = vsel %vm102_vm10, 1.0, %v1725_v1  ;;  %vm371_vm10 = vcmask 106544  }
 0x9d3   :  { %v105_v32 = vpack.c.bf16 %v1429_v40, %v1429_v40  ;;  %v445_v45 = vpop.xlane.xlu0 %444  ;;  %v295_v50 = vadd.s32 %v294_v13, %v292_v43  ;;  %v784_v40 = vshll.u32 %v783_v27, 16  ;;  %v1452_v43 = vld [vmem:[%s2279_s2 + $0x14] sm:$0x7]  ;;  %s1733_s2 = smov 122  }
 0x9d4   :  { %v446_v39 = vcvt.f32.s32 %v445_v45  ;;  %v966_v45 = vcvt.f32.s32 %v2009_v21 }
 0x9d5   :  { %1517 = vmatmul.mubr.msk.bf16.vlgmr.msra.gmra.mrb[0].mxu1 %vm79_vm11, %v105_v32  ;;  %vm296_vm12 = vcmp.eq.s32.totalorder %v1785_v10, %v295_v50  ;;  %v794_v50 = vsel %vm109_vm4, %v1887_v36, 0 }
 0x9d6   :  { %1527 = vmatpush3.bf16.msra.mxu1 %v308_v48  ;;  %1528 = vmatprep.mubr.msk.bf16.mxu1 %vm1726_vm1, %v1725_v1  ;;  %v1434_v52 = vsel %vm296_vm12, 1.0, %v1725_v1  ;;  %v449_v44 = vadd.s32 %v448_v53, %v446_v39  ;;  %v1461_v39 = vcombine.low %v1887_v36, %v1452_v43  ;;  %v967_v53 = vshll.u32 %v966_v45, 16 }
 0x9d7   :  { %1538 = vmatprep.subr.bf16.mxu1 %v1725_v1  ;;  %v628_v49 = vpop.xlane.xlu1 %627  ;;  %v299_v12 = vpack.c.bf16 %v1434_v52, %v1434_v52  ;;  %vm1396_vm12 = vcmask 195584  }
 0x9d8   :  { %vm450_vm13 = vcmp.eq.s32.totalorder %v1785_v10, %v449_v44  ;;  %v629_v2 = vcvt.f32.s32 %v628_v49  ;;  %v976_v52 = vrot.slane %v1461_v39, 3 }
 0x9d9   :  { %v1442_v31 = vsel %vm450_vm13, 1.0, %v1725_v1  ;;  %vm1398_vm13 = vcmask 261120  }
 0x9da   :  { %v632_v19 = vadd.s32 %v631_v30, %v629_v2  ;;  %v453_v33 = vpack.c.bf16 %v1442_v31, %v1442_v31  ;;  %v981_v49 = vsel %vm35_vm0, %v976_v52, 0 }
 0x9db   :  { %v781_v28 = vpop.xlane.xlu0 %780 }
 0x9dc   :  { %vm633_vm14 = vcmp.eq.s32.totalorder %v1785_v10, %v632_v19  ;;  %v782_v13 = vcvt.f32.s32 %v781_v28  ;;  %v1302_v19 = vcvt.f32.s32 %v2034_v17 }
 0x9dd   :  { %1529 = vmatmul.mubr.msk.bf16.vlgmr.msra.gmra.mrb[4].mxu1 %vm31_vm2, %v299_v12  ;;  %v1447_v24 = vsel %vm633_vm14, 1.0, %v1725_v1  ;;  %v1130_v12 = vsel %vm109_vm4, %v2064_v18, 0 }
 0x9de   :  { %1539 = vmatpush3.bf16.msra.mxu1 %v458_v14  ;;  %1540 = vmatprep.mubr.msk.bf16.mxu1 %vm1726_vm1, %v1725_v1  ;;  %v785_v42 = vadd.s32 %v784_v40, %v782_v13  ;;  %v636_v48 = vpack.c.bf16 %v1447_v24, %v1447_v24  ;;  %v1206_v14 = vcvt.f32.s32 %v2019_v34  ;;  %v1312_v34 = vrot.slane %v1474_v3, 3 }
 0x9df   :  { %1550 = vmatprep.subr.bf16.mxu1 %v1725_v1  ;;  %v964_v32 = vpop.xlane.xlu1 %963  ;;  %v1303_v40 = vshll.u32 %v1302_v19, 16 }
 0x9e0   :  { %vm786_vm6 = vcmp.eq.s32.totalorder %v1785_v10, %v785_v42  ;;  %v965_v51 = vcvt.f32.s32 %v964_v32  ;;  %v1207_v30 = vshll.u32 %v1206_v14, 16  ;;  %v1317_v32 = vsel %vm35_vm0, %v1312_v34, 0 }
 0x9e1   :  { %v1455_v21 = vsel %vm786_vm6, 1.0, %v1725_v1  ;;  %vm169_vm0 = vcmask 8192  }
 0x9e2   :  { %v968_v8 = vadd.s32 %v967_v53, %v965_v51  ;;  %v789_v44 = vpack.c.bf16 %v1455_v21, %v1455_v21 }
 0x9e4   :  { %vm969_vm5 = vcmp.eq.s32.totalorder %v1785_v10, %v968_v8 }
 0x9e5   :  { %1541 = vmatmul.mubr.msk.bf16.vlgmr.msra.gmra.mrb[8].mxu1 %vm79_vm11, %v453_v33  ;;  %255 = vrot.lane.b32.xlu0 %v2077_v23, %s1732_s20  ;;  %v1460_v36 = vsel %vm969_vm5, 1.0, %v1725_v1 }
 0x9e6   :  { %1551 = vmatpush3.bf16.msra.mxu1 %v645_v38  ;;  %1552 = vmatprep.mubr.msk.bf16.mxu1 %vm1726_vm1, %v1725_v1  ;;  %v972_v11 = vpack.c.bf16 %v1460_v36, %v1460_v36 }
 0x9e7   :  { %1562 = vmatprep.subr.bf16.mxu1 %v1725_v1 }
 0x9ed   :  { %1553 = vmatmul.mubr.msk.bf16.vlgmr.msra.gmra.mrb[12].mxu1 %vm31_vm2, %v636_v48 }
 0x9ee   :  { %1563 = vmatpush3.bf16.msra.mxu1 %v794_v50  ;;  %1564 = vmatprep.mubr.msk.bf16.mxu1 %vm1726_vm1, %v1725_v1  ;;  %v352_v50 = vmul.f32 1.442695, %v351_v59 }
 0x9ef   :  { %1574 = vmatprep.subr.bf16.mxu1 %v1725_v1 }
 0x9f5   :  { %1565 = vmatmul.mubr.msk.bf16.vlgmr.msra.gmra.mrb[16].mxu1 %vm79_vm11, %v789_v44 }
 0x9f6   :  { %1575 = vmatpush3.bf16.msra.mxu1 %v981_v49  ;;  %1576 = vmatprep.mubr.msk.bf16.mxu1 %vm1726_vm1, %v1725_v1 }
 0x9f7   :  { %1586 = vmatprep.subr.bf16.mxu1 %v1725_v1 }
 0x9fd   :  { %1577 = vmatmul.mubr.msk.bf16.vlgmr.msra.gmra.mrb[20].mxu1 %vm31_vm2, %v972_v11 }
 0x9fe   :  { %1587 = vmatpush3.bf16.msra.mxu1 %v1130_v12  ;;  %1588 = vmatprep.mubr.msk.bf16.mxu1 %vm1726_vm1, %v1725_v1 }
 0x9ff   :  { %1598 = vmatprep.subr.bf16.mxu1 %v1725_v1 }
 0xa58   :  { %v1204_v2 = vpop.xlane.xlu1 %1203  ;;  %v1117_v55 = vpop.xlane.xlu0 %1116 }
 0xa59   :  { %v1205_v31 = vcvt.f32.s32 %v1204_v2  ;;  %v1118_v28 = vcvt.f32.s32 %v1117_v55 }
 0xa5b   :  { %v1208_v27 = vadd.s32 %v1207_v30, %v1205_v31  ;;  %v1121_v33 = vadd.s32 %v1120_v25, %v1118_v28 }
 0xa5c   :  { %v158_v38 = vpop.xlane.xlu1 %157  ;;  %v1300_v13 = vpop.xlane.xlu0 %1299 }
 0xa5d   :  { %vm1209_vm4 = vcmp.eq.s32.totalorder %v1785_v10, %v1208_v27  ;;  %1633 = vrcp.f32 %v158_v38  ;;  %vm1122_vm7 = vcmp.eq.s32.totalorder %v1785_v10, %v1121_v33  ;;  %v1301_v18 = vcvt.f32.s32 %v1300_v13 }
 0xa5e   :  { %v1470_v47 = vsel %vm1209_vm4, 1.0, %v1725_v1  ;;  %v1468_v24 = vsel %vm1122_vm7, 1.0, %v1725_v1  ;;  %1635 = vpow2.f32 %v352_v50 }
 0xa5f   :  { %v1212_v43 = vpack.c.bf16 %v1470_v47, %v1470_v47  ;;  %v1125_v42 = vpack.c.bf16 %v1468_v24, %v1468_v24  ;;  %v1304_v17 = vadd.s32 %v1303_v40, %v1301_v18  ;;  %1637 = vpow2.f32 %v501_v58 }
 0xa60   :  { %v256_v45 = vpop.permute.xlu0 %255 }
 0xa61   :  { %1595 = vmatmul.mubr.msk.bf16.vlgmr.msra.gmra.mrb[28].mxu0 %vm202_vm8, %v1212_v43  ;;  %vm1305_vm9 = vcmp.eq.s32.totalorder %v1785_v10, %v1304_v17  ;;  %1589 = vmatmul.mubr.msk.bf16.vlgmr.msra.gmra.mrb[24].mxu1 %vm79_vm11, %v1125_v42  ;;  %v258_v48 = vsel %vm202_vm8, %v256_v45, 0.0 }
 0xa62   :  { %259 = vadd.xlane.f32.xlu1 %v258_v48  ;;  %1599 = vmatpush3.bf16.msra.mxu1 %v1317_v32  ;;  %v1473_v39 = vsel %vm1305_vm9, 1.0, %v1725_v1 }
 0xa63   :  { %1600 = vmatprep.mubr.msk.bf16.mxu1 %vm1726_vm1, %v1725_v1  ;;  %v1308_v53 = vpack.c.bf16 %v1473_v39, %v1473_v39  ;;  %vm271_vm1 = vcmask 40976  }
 0xa67   :  { %v1634_v51 = vpop.eup %1633 }
 0xa68   :  { %v160_v52 = vmul.f32 %v1634_v51, %v2031_v6  ;;  %v2138_v36 = vpop.eup %1635 }
 0xa69   :  { %1601 = vmatmul.mubr.msk.bf16.vlgmr.msra.gmra.mrb[28].mxu1 %vm31_vm2, %v1308_v53  ;;  %v2145_v59 = vpop.eup %1637  ;;  %v592_v53 = vsub.f32 %v1825_v41, %v1829_v46 }
 0xa6a   :  { %v162_v10 = vsel %vm79_vm11, %v160_v52, 0.0  ;;  %v503_v6 = vsel %vm79_vm11, %v2145_v59, 0.0 }
 0xa6b   :  { %v163_v21 = vrot.slane %v162_v10, 4 }
 0xa6d   :  { %v164_v8 = vadd.f32 %v163_v21, %v162_v10  ;;  %v593_v10 = vmul.f32 1.442695, %v592_v53  ;;  %v1264_v21 = vsub.f32 %v1935_v9, %v1961_v54  ;;  %v1361_v54 = vmul.f32 1.442695, %v1360_v22 }
 0xa6f   :  { %v165_v44 = vrot.slane %v164_v8, 2 }
 0xa71   :  { %v166_v49 = vadd.f32 %v165_v44, %v164_v8 }
 0xa73   :  { %v167_v11 = vrot.slane %v166_v49, 1  ;;  %355 = vrot.lane.b32.xlu1 %v2138_v36, %s1733_s2 }
 0xa75   :  { %v168_v1 = vadd.f32 %v167_v11, %v166_v49  ;;  %v1265_v49 = vmul.f32 1.442695, %v1264_v21 }
 0xa77   :  { %170 = vst.msk [vmem:[#allocation4] sm:$0x1] %vm169_vm0, %v168_v1 }
 0xa97   :  { %504 = vadd.xlane.f32.xlu1 %v503_v6 }
 0xaa8   :  { %v147_v12 = vpop.f32.mrb[0].mxu1 }
 0xaa9   :  { %v250_v14 = vmax.f32 %v147_v12, %v1823_v37  ;;  %v1518_v15 = vpop.f32.mrb[1].mxu1 }
 0xaaa   :  { %v150_v29 = vpop.f32.mrb[2].mxu1 }
 0xaab   :  { %v1519_v2 = vpop.f32.mrb[3].mxu1 }
 0xab0   :  { %v344_v3 = vpop.f32.mrb[4].mxu1 }
 0xab1   :  { %v2150_v30 = vmax.f32 %v250_v14, %v344_v3  ;;  %v1530_v55 = vpop.f32.mrb[5].mxu1 }
 0xab2   :  { %v347_v31 = vpop.f32.mrb[6].mxu1 }
 0xab3   :  { %v1531_v5 = vpop.f32.mrb[7].mxu1 }
 0xab8   :  { %v494_v25 = vpop.f32.mrb[8].mxu1 }
 0xab9   :  { %v591_v19 = vmax.f32 %v494_v25, %v1868_v16  ;;  %v1542_v28 = vpop.f32.mrb[9].mxu1 }
 0xaba   :  { %v497_v27 = vpop.f32.mrb[10].mxu1 }
 0xabb   :  { %v1543_v33 = vpop.f32.mrb[11].mxu1 }
 0xac0   :  { %v681_v38 = vpop.f32.mrb[12].mxu1 }
 0xac1   :  { %v2153_v34 = vmax.f32 %v591_v19, %v681_v38  ;;  %v1554_v13 = vpop.f32.mrb[13].mxu1 }
 0xac2   :  { %v684_v37 = vpop.f32.mrb[14].mxu1 }
 0xac3   :  { %v1555_v40 = vpop.f32.mrb[15].mxu1 }
 0xac8   :  { %v830_v47 = vpop.f32.mrb[16].mxu1 }
 0xac9   :  { %v927_v18 = vmax.f32 %v830_v47, %v1926_v0  ;;  %v1566_v24 = vpop.f32.mrb[17].mxu1 }
 0xaca   :  { %v833_v43 = vpop.f32.mrb[18].mxu1 }
 0xacb   :  { %v1567_v42 = vpop.f32.mrb[19].mxu1 }
 0xad0   :  { %v1017_v17 = vpop.f32.mrb[20].mxu1 }
 0xad1   :  { %v2156_v32 = vmax.f32 %v927_v18, %v1017_v17  ;;  %v1578_v45 = vpop.f32.mrb[21].mxu1  ;;  %v928_v17 = vsub.f32 %v1870_v20, %v1874_v26 }
 0xad2   :  { %v1020_v16 = vpop.f32.mrb[22].mxu1 }
 0xad3   :  { %v1579_v48 = vpop.f32.mrb[23].mxu1 }
 0xad4   :  { %v929_v48 = vmul.f32 1.442695, %v928_v17 }
 0xaef   :  { %v260_v50 = vpop.xlane.xlu1 %259 }
 0xaf0   :  { %1639 = vrcp.f32 %v260_v50  ;;  %v1024_v50 = vsub.f32 %v1870_v20, %v1953_v35 }
 0xaf1   :  { %1641 = vpow2.f32 %v593_v10 }
 0xaf2   :  { %1643 = vpow2.f32 %v1265_v49 }
 0xaf3   :  { %v356_v39 = vpop.permute.xlu1 %355  ;;  %1645 = vpow2.f32 %v689_v4 }
 0xaf4   :  { %v358_v51 = vsel %vm31_vm2, %v356_v39, 0.0  ;;  %1647 = vpow2.f32 %v1361_v54 }
 0xaf5   :  { %359 = vadd.xlane.f32.xlu0 %v358_v51  ;;  %v1025_v51 = vmul.f32 1.442695, %v1024_v50 }
 0xafa   :  { %v1640_v52 = vpop.eup %1639 }
 0xafb   :  { %v262_v0 = vmul.f32 %v1640_v52, %v2077_v23  ;;  %v2171_v6 = vpop.eup %1641 }
 0xafc   :  { %v2176_v41 = vpop.eup %1643 }
 0xafd   :  { %v264_v8 = vsel %vm171_vm3, %v262_v0, 0.0  ;;  %v2180_v60 = vpop.eup %1645 }
 0xafe   :  { %v265_v44 = vrot.slane %v264_v8, 4  ;;  %v2184_v61 = vpop.eup %1647 }
 0xb00   :  { %v266_v11 = vadd.f32 %v265_v44, %v264_v8 }
 0xb02   :  { %v267_v1 = vrot.slane %v266_v11, 2 }
 0xb04   :  { %v268_v46 = vadd.f32 %v267_v1, %v266_v11 }
 0xb06   :  { %v269_v58 = vrot.slane %v268_v46, 1 }
 0xb08   :  { %v270_v23 = vadd.f32 %v269_v58, %v268_v46 }
 0xb0a   :  { %272 = vst.msk [vmem:[#allocation4] sm:$0x1] %vm271_vm1, %v270_v23 }
 0xb0b   :  { %596 = vrot.lane.b32.xlu0 %v2171_v6, %s1732_s20 }
 0xb0f   :  { %1268 = vrot.lane.b32.xlu0 %v2176_v41, %s1732_s20 }
 0xb13   :  { %692 = vrot.lane.b32.xlu0 %v2180_v60, %s1733_s2 }
 0xb17   :  { %1364 = vrot.lane.b32.xlu0 %v2184_v61, %s1733_s2 }
 0xb24   :  { %v505_v22 = vpop.xlane.xlu1 %504 }
 0xb25   :  { %1649 = vrcp.f32 %v505_v22 }
 0xb26   :  { %1651 = vpow2.f32 %v837_v7 }
 0xb2f   :  { %v1650_v12 = vpop.eup %1649 }
 0xb30   :  { %v507_v14 = vmul.f32 %v1650_v12, %v2145_v59  ;;  %v1652_v15 = vpop.eup %1651 }
 0xb31   :  { %v839_v28 = vsel %vm79_vm11, %v1652_v15, 0.0 }
 0xb32   :  { %v509_v29 = vsel %vm79_vm11, %v507_v14, 0.0 }
 0xb33   :  { %v510_v2 = vrot.slane %v509_v29, 4 }
 0xb34   :  { %v1257_v3 = vpop.f32.mrb[28].mxu0  ;;  %v1166_v55 = vpop.f32.mrb[24].mxu1 }
 0xb35   :  { %v1596_v31 = vpop.f32.mrb[29].mxu0  ;;  %v511_v5 = vadd.f32 %v510_v2, %v509_v29  ;;  %v1263_v25 = vmax.f32 %v1166_v55, %v1257_v3  ;;  %v1590_v19 = vpop.f32.mrb[25].mxu1  ;;  %v1173_v2 = vmul.f32 1.442695, %v1172_v57 }
 0xb36   :  { %v1260_v62 = vpop.f32.mrb[30].mxu0  ;;  %v1169_v63 = vpop.f32.mrb[26].mxu1  ;;  %840 = vadd.xlane.f32.xlu0 %v839_v28 }
 0xb37   :  { %v1597_v27 = vpop.f32.mrb[31].mxu0  ;;  %v512_v33 = vrot.slane %v511_v5, 2  ;;  %v1591_v38 = vpop.f32.mrb[27].mxu1 }
 0xb39   :  { %v513_v13 = vadd.f32 %v512_v33, %v511_v5 }
 0xb3b   :  { %v514_v59 = vrot.slane %v513_v13, 1 }
 0xb3c   :  { %v1353_v37 = vpop.f32.mrb[28].mxu1 }
 0xb3d   :  { %v2194_v40 = vmax.f32 %v1263_v25, %v1353_v37  ;;  %v1602_v47 = vpop.f32.mrb[29].mxu1  ;;  %v515_v18 = vadd.f32 %v514_v59, %v513_v13 }
 0xb3e   :  { %v1356_v24 = vpop.f32.mrb[30].mxu1 }
 0xb3f   :  { %v1603_v43 = vpop.f32.mrb[31].mxu1  ;;  %516 = vst.msk [vmem:[#allocation4 + $0x1] sm:$0x1] %vm169_vm0, %v515_v18 }
 0xb82   :  { %v360_v42 = vpop.xlane.xlu0 %359 }
 0xb83   :  { %1653 = vrcp.f32 %v360_v42 }
 0xb84   :  { %1655 = vpow2.f32 %v929_v48 }
 0xb85   :  { %1657 = vpow2.f32 %v1025_v51 }
 0xb86   :  { %v597_v45 = vpop.permute.xlu0 %596 }
 0xb87   :  { %v599_v16 = vsel %vm202_vm8, %v597_v45, 0.0 }
 0xb88   :  { %600 = vadd.xlane.f32.xlu1 %v599_v16 }
 0xb8d   :  { %v1654_v39 = vpop.eup %1653 }
 0xb8e   :  { %v362_v53 = vmul.f32 %v1654_v39, %v2138_v36  ;;  %v2204_v8 = vpop.eup %1655  ;;  %v1269_v36 = vpop.permute.xlu0 %1268 }
 0xb8f   :  { %v2208_v35 = vpop.eup %1657  ;;  %v1271_v57 = vsel %vm202_vm8, %v1269_v36, 0.0 }
 0xb90   :  { %v364_v52 = vsel %vm273_vm15, %v362_v53, 0.0 }
 0xb91   :  { %v365_v0 = vrot.slane %v364_v52, 4 }
 0xb92   :  { %v693_v49 = vpop.permute.xlu0 %692 }
 0xb93   :  { %v366_v10 = vadd.f32 %v365_v0, %v364_v52  ;;  %v695_v1 = vsel %vm31_vm2, %v693_v49, 0.0 }
 0xb95   :  { %v367_v21 = vrot.slane %v366_v10, 2 }
 0xb96   :  { %v1365_v11 = vpop.permute.xlu0 %1364 }
 0xb97   :  { %v368_v26 = vadd.f32 %v367_v21, %v366_v10  ;;  %v1367_v56 = vsel %vm31_vm2, %v1365_v11, 0.0 }
 0xb99   :  { %932 = vrot.lane.b32.xlu1 %v2204_v8, %s1732_s20  ;;  %v369_v44 = vrot.slane %v368_v26, 1 }
 0xb9b   :  { %v370_v20 = vadd.f32 %v369_v44, %v368_v26 }
 0xb9d   :  { %1028 = vrot.lane.b32.xlu1 %v2208_v35, %s1733_s2  ;;  %372 = vst.msk [vmem:[#allocation4] sm:$0x1] %vm371_vm10, %v370_v20 }
 0xbc1   :  { %696 = vadd.xlane.f32.xlu1 %v695_v1 }
 0xbc3   :  { %v841_v4 = vpop.xlane.xlu0 %840 }
 0xbc4   :  { %1659 = vrcp.f32 %v841_v4 }
 0xbc5   :  { %1661 = vpow2.f32 %v1173_v2 }
 0xbce   :  { %v1660_v46 = vpop.eup %1659 }
 0xbcf   :  { %v843_v58 = vmul.f32 %v1660_v46, %v1652_v15  ;;  %v2220_v31 = vpop.eup %1661 }
 0xbd0   :  { %v1175_v25 = vsel %vm79_vm11, %v2220_v31, 0.0 }
 0xbd1   :  { %v845_v54 = vsel %vm79_vm11, %v843_v58, 0.0 }
 0xbd2   :  { %v846_v23 = vrot.slane %v845_v54, 4 }
 0xbd4   :  { %v847_v7 = vadd.f32 %v846_v23, %v845_v54 }
 0xbd6   :  { %v848_v22 = vrot.slane %v847_v7, 2 }
 0xbd8   :  { %v849_v12 = vadd.f32 %v848_v22, %v847_v7 }
 0xbda   :  { %v850_v14 = vrot.slane %v849_v12, 1 }
 0xbdc   :  { %v851_v29 = vadd.f32 %v850_v14, %v849_v12 }
 0xbde   :  { %852 = vst.msk [vmem:[#allocation4 + $0x2] sm:$0x1] %vm169_vm0, %v851_v29 }
 0xc15   :  { %v601_v3 = vpop.xlane.xlu1 %600 }
 0xc16   :  { %1663 = vrcp.f32 %v601_v3 }
 0xc19   :  { %v933_v55 = vpop.permute.xlu1 %932 }
 0xc1a   :  { %v935_v15 = vsel %vm202_vm8, %v933_v55, 0.0  ;;  %vm1394_vm8 = vcmask 130048  }
 0xc1b   :  { %936 = vadd.xlane.f32.xlu0 %v935_v15 }
 0xc1d   :  { %v1029_v5 = vpop.permute.xlu1 %1028 }
 0xc1e   :  { %v1031_v19 = vsel %vm31_vm2, %v1029_v5, 0.0 }
 0xc1f   :  { %1176 = vadd.xlane.f32.xlu0 %v1175_v25  ;;  %1032 = vadd.xlane.f32.xlu1 %v1031_v19 }
 0xc20   :  { %v1664_v28 = vpop.eup %1663 }
 0xc21   :  { %v603_v9 = vmul.f32 %v1664_v28, %v2171_v6 }
 0xc23   :  { %v605_v62 = vsel %vm171_vm3, %v603_v9, 0.0  ;;  %1368 = vadd.xlane.f32.xlu0 %v1367_v56  ;;  %1272 = vadd.xlane.f32.xlu1 %v1271_v57 }
 0xc24   :  { %v606_v63 = vrot.slane %v605_v62, 4 }
 0xc26   :  { %v607_v27 = vadd.f32 %v606_v63, %v605_v62 }
 0xc28   :  { %v608_v33 = vrot.slane %v607_v27, 2 }
 0xc2a   :  { %v609_v38 = vadd.f32 %v608_v33, %v607_v27 }
 0xc2c   :  { %v610_v13 = vrot.slane %v609_v38, 1 }
 0xc2e   :  { %v611_v59 = vadd.f32 %v610_v13, %v609_v38 }
 0xc30   :  { %612 = vst.msk [vmem:[#allocation4 + $0x1] sm:$0x1] %vm271_vm1, %v611_v59 }
 0xc34   :  { %1382 = vrot.lane.b32.xlu1 %v2153_v34, %s1734_s25 }
 0xc38   :  { %1390 = vrot.lane.b32.xlu1 %v2194_v40, %s1735_s26 }
 0xc39   :  { %1386 = vrot.lane.b32.xlu0 %v2156_v32, %s1736_s27 }
 0xc4e   :  { %v697_v6 = vpop.xlane.xlu1 %696 }
 0xc4f   :  { %1665 = vrcp.f32 %v697_v6 }
 0xc59   :  { %v1666_v37 = vpop.eup %1665 }
 0xc5a   :  { %v699_v47 = vmul.f32 %v1666_v37, %v2180_v60 }
 0xc5c   :  { %v701_v18 = vsel %vm273_vm15, %v699_v47, 0.0 }
 0xc5d   :  { %v702_v24 = vrot.slane %v701_v18, 4 }
 0xc5f   :  { %v703_v43 = vadd.f32 %v702_v24, %v701_v18 }
 0xc61   :  { %v704_v42 = vrot.slane %v703_v43, 2 }
 0xc63   :  { %v705_v17 = vadd.f32 %v704_v42, %v703_v43 }
 0xc65   :  { %v706_v45 = vrot.slane %v705_v17, 1 }
 0xc67   :  { %v707_v16 = vadd.f32 %v706_v45, %v705_v17 }
 0xc69   :  { %708 = vst.msk [vmem:[#allocation4 + $0x1] sm:$0x1] %vm371_vm10, %v707_v16 }
 0xca8   :  { %v937_v34 = vpop.xlane.xlu0 %936 }
 0xca9   :  { %1667 = vrcp.f32 %v937_v34 }
 0xcac   :  { %v1177_v40 = vpop.xlane.xlu0 %1176  ;;  %v1033_v48 = vpop.xlane.xlu1 %1032 }
 0xcad   :  { %1669 = vrcp.f32 %v1177_v40 }
 0xcae   :  { %1671 = vrcp.f32 %v1033_v48 }
 0xcb0   :  { %v1369_v32 = vpop.xlane.xlu0 %1368  ;;  %v1273_v50 = vpop.xlane.xlu1 %1272 }
 0xcb1   :  { %1673 = vrcp.f32 %v1369_v32 }
 0xcb2   :  { %1675 = vrcp.f32 %v1273_v50 }
 0xcb3   :  { %v1668_v60 = vpop.eup %1667 }
 0xcb4   :  { %v939_v39 = vmul.f32 %v1668_v60, %v2204_v8  ;;  %v1383_v51 = vpop.permute.xlu1 %1382  ;;  %v1387_v53 = vpop.permute.xlu0 %1386 }
 0xcb5   :  { %v1393_v52 = vsel %vm31_vm2, %v2150_v30, %v1383_v51 }
 0xcb6   :  { %v941_v0 = vsel %vm171_vm3, %v939_v39, 0.0  ;;  %v1395_v36 = vsel %vm1394_vm8, %v1393_v52, %v1387_v53 }
 0xcb7   :  { %v1670_v10 = vpop.eup %1669  ;;  %v942_v21 = vrot.slane %v941_v0, 4 }
 0xcb8   :  { %v1672_v26 = vpop.eup %1671  ;;  %v1179_v44 = vmul.f32 %v1670_v10, %v2220_v31  ;;  %v1391_v20 = vpop.permute.xlu1 %1390 }
 0xcb9   :  { %v943_v8 = vadd.f32 %v942_v21, %v941_v0  ;;  %v1035_v49 = vmul.f32 %v1672_v26, %v2208_v35  ;;  %v1397_v11 = vsel %vm1396_vm12, %v1395_v36, %v1391_v20 }
 0xcba   :  { %v1181_v30 = vsel %vm79_vm11, %v1179_v44, 0.0  ;;  %1399 = vst.msk [vmem:[#allocation2] sm:$0xff] %vm1398_vm13, %v1397_v11 }
 0xcbb   :  { %v1674_v1 = vpop.eup %1673  ;;  %v944_v4 = vrot.slane %v943_v8, 2  ;;  %v1182_v46 = vrot.slane %v1181_v30, 4  ;;  %v1037_v58 = vsel %vm273_vm15, %v1035_v49, 0.0 }
 0xcbc   :  { %1688 = shalt.err (!%p1685_p4)
}
 0xcbd   :  { %s1689_s7 = scalar_lea.hbm %s2280_s3, 128 }
 0xcbe   :  { %p1690_p5 = scmp.ne.s32.totalorder %s2280_s3, %s1689_s7  ;;  %p1693_p6 = scmp.lt.u32.totalorder %s1689_s7, %s2280_s3 }
 0xcc0   :  { %p1695_p7 = pnand %p1693_p6, %p1690_p5 }
 0xcc2   :  { %1698 = shalt.err (!%p1695_p7)
}
 0xcc3   :  { %1409 = dma.vmem_to_hbm [thread:$0]  %s1407_s29, 128, %s2280_s3, [#allocation3]   ;;  %v1676_v35 = vpop.eup %1675  ;;  %v1038_v54 = vrot.slane %v1037_v58, 4  ;;  %v1371_v23 = vmul.f32 %v1674_v1, %v2184_v61  ;;  %v945_v7 = vadd.f32 %v944_v4, %v943_v8  ;;  %v1183_v22 = vadd.f32 %v1182_v46, %v1181_v30 }
 0xcc4   :  { %v1275_v12 = vmul.f32 %v1676_v35, %v2176_v41  ;;  %s1738_s3 = smov [#allocation4]  }
 0xcc5   :  { %v1039_v14 = vadd.f32 %v1038_v54, %v1037_v58  ;;  %v1373_v29 = vsel %vm273_vm15, %v1371_v23, 0.0  ;;  %v1184_v2 = vrot.slane %v1183_v22, 2  ;;  %v946_v15 = vrot.slane %v945_v7, 1  ;;  %s1416_s0 = sshll.u32 %s1738_s3, 4  ;;  %s1417_s0 = int_to_ptr.vmem [resolvable:$true] %s1416_s0 }
 0xcc6   :  { %v1374_v3 = vrot.slane %v1373_v29, 4  ;;  %v1277_v55 = vsel %vm171_vm3, %v1275_v12, 0.0  ;;  %s1699_s14 = scalar_lea.vmem %s1417_s0, 64  ;;  %p1704_p9 = scmp.lt.s32.totalorder %s1417_s0, %s1417_s0 }
 0xcc7   :  { %v1040_v31 = vrot.slane %v1039_v14, 2  ;;  %v1278_v5 = vrot.slane %v1277_v55, 4  ;;  %v1185_v25 = vadd.f32 %v1184_v2, %v1183_v22  ;;  %v947_v28 = vadd.f32 %v946_v15, %v945_v7  ;;  %p1700_p8 = scmp.ne.s32.totalorder %s1417_s0, %s1699_s14  ;;  %p1705_p10 = scmp.lt.s32.totalorder %s1699_s14, %s1699_s14 }
 0xcc8   :  { %v1375_v19 = vadd.f32 %v1374_v3, %v1373_v29 }
 0xcc9   :  { %v1279_v9 = vadd.f32 %v1278_v5, %v1277_v55  ;;  %v1041_v56 = vadd.f32 %v1040_v31, %v1039_v14  ;;  %948 = vst.msk [vmem:[#allocation4 + $0x2] sm:$0x1] %vm271_vm1, %v947_v28  ;;  %v1186_v57 = vrot.slane %v1185_v25, 1  ;;  %p1706_p11 = por %p1705_p10, %p1704_p9 }
 0xcca   :  { %v1376_v61 = vrot.slane %v1375_v19, 2 }
 0xccb   :  { %v1280_v41 = vrot.slane %v1279_v9, 2  ;;  %v1042_v62 = vrot.slane %v1041_v56, 1  ;;  %v1187_v63 = vadd.f32 %v1186_v57, %v1185_v25  ;;  %p1707_p12 = pnand %p1706_p11, %p1700_p8 }
 0xccc   :  { %v1377_v27 = vadd.f32 %v1376_v61, %v1375_v19 }
 0xccd   :  { %v1281_v33 = vadd.f32 %v1280_v41, %v1279_v9  ;;  %v1043_v38 = vadd.f32 %v1042_v62, %v1041_v56  ;;  %1188 = vst.msk [vmem:[#allocation4 + $0x3] sm:$0x1] %vm169_vm0, %v1187_v63 }
 0xcce   :  { %v1378_v13 = vrot.slane %v1377_v27, 1 }
 0xccf   :  { %1044 = vst.msk [vmem:[#allocation4 + $0x2] sm:$0x1] %vm371_vm10, %v1043_v38  ;;  %v1282_v59 = vrot.slane %v1281_v33, 1 }
 0xcd0   :  { %v1379_v6 = vadd.f32 %v1378_v13, %v1377_v27 }
 0xcd1   :  { %v1283_v37 = vadd.f32 %v1282_v59, %v1281_v33 }
 0xcd3   :  { %1284 = vst.msk [vmem:[#allocation4 + $0x3] sm:$0x1] %vm271_vm1, %v1283_v37 }
 0xcd4   :  { %1380 = vst.msk [vmem:[#allocation4 + $0x3] sm:$0x1] %vm371_vm10, %v1379_v6 }
 0xcd5   :  { %1710 = shalt.err (!%p1707_p12)
}
 0xcd6   :  { %s1711_s16 = scalar_lea.hbm %s2281_s4, 64 }
 0xcd7   :  { %p1712_p13 = scmp.ne.s32.totalorder %s2281_s4, %s1711_s16  ;;  %p1715_p0 = scmp.lt.u32.totalorder %s1711_s16, %s2281_s4 }
 0xcd9   :  { %p1717_p1 = pnand %p1715_p0, %p1712_p13 }
 0xcdb   :  { %1720 = shalt.err (!%p1717_p1)
}
 0xcdc   :  { %1419 = dma.vmem_to_hbm [thread:$0]  %s1417_s0, 64, %s2281_s4, [#allocation5]  }
 0xcdd   :  { %1721 = dma.done.wait [#allocation3], 128  }
 0xcde   :  { %1722 = vsyncadd [#allocation3], 4294967168 }
 0xcdf   :  { %1723 = dma.done.wait [#allocation5], 64  }
 0xce0   :  { %1724 = vsyncadd [#allocation5], 4294967232 }
 0xce1   :  { %1426 = vsyncpa [#allocation3], 1 }
 0xce2   :  { %1427 = vsyncpa [#allocation5], 1 }

</bundles_post_ra>
